<compile_context>
chip_gen: v7x
topology: tpu7x:2x2x1
jax: 0.10.0
libtpu: 0.0.40
codegen_flags: <defaults>
</compile_context>

<pallas_src>
import jax
import jax.numpy as jnp
from jax.experimental import pallas as pl
from jax.experimental.pallas import tpu as pltpu

_MIB = 1024 * 1024


# ---------------------------------------------------------------------------
# Hardware / budget helpers.
# ---------------------------------------------------------------------------
def _vmem_capacity_bytes():
    """Physical VMEM per TensorCore; conservative (v7x) fallback."""
    try:
        cap = int(getattr(pltpu.get_tpu_info(), "vmem_capacity_bytes"))
        if cap > 0:
            return cap
    except Exception:
        pass
    return 64 * _MIB  # v7x worst case


def _vmem_limit_bytes():
    # ~48 MiB on v7x (64 MiB VMEM), 64 MiB on v5e/v6e (128 MiB VMEM).
    return min(3 * _vmem_capacity_bytes() // 4, 64 * _MIB)


def _choose_fused_batch_tile(B, C, HW, itemsize, vmem_limit):
    """Largest per-step batch tile for the fused path, or None if it can't fit."""
    slab = C * HW * itemsize            # one batch row of x
    budget = (4 * vmem_limit) // 5      # headroom for weights / scratch
    if 4 * slab > budget:               # in + out, double-buffered, at tb=1
        return None
    tb = 1
    for cand in range(1, B + 1):
        if B % cand:
            continue
        if 4 * cand * slab > budget:
            continue
        if B > 1 and B // cand < 2:     # keep >= 2 grid steps (v7x / pipelining)
            continue
        tb = cand
    return tb


def _choose_tiles(B, C, HW, itemsize, target_block_bytes=8 * _MIB):
    """(tb, tc) for the two-pass path: ~8 MiB, (8,128)-aligned blocks."""
    tb, tc = B, C

    def blk(tb_, tc_):
        return tb_ * tc_ * HW * itemsize

    # Shrink the channel tile first (stays a multiple of 128).
    while tc % 256 == 0 and blk(tb, tc) > target_block_bytes:
        tc //= 2
    # Then the batch tile (tb stays a multiple of 8, or == B).
    while tb % 16 == 0 and blk(tb, tc) > target_block_bytes:
        tb //= 2
    # Guarantee >= 2 grid steps where alignment allows (v7x: 2 TensorCores).
    if tb == B and tc == C:
        if C % 256 == 0:
            tc //= 2
        elif B % 16 == 0:
            tb //= 2
    return tb, tc


# ---------------------------------------------------------------------------
# Kernels.
# ---------------------------------------------------------------------------
def _fused_kernel(x_ref, w1t_ref, w2t_ref, o_ref):
    # x_ref : (tb, C, HW)   w1t_ref: (C, C_red)   w2t_ref: (C_red, C)
    x = x_ref[...]
    hw = x.shape[-1]

    # Global pooling: f32-accumulating sum + native-dtype max (no full-tile cast).
    avg = jnp.sum(x, axis=-1, dtype=jnp.float32) * (1.0 / hw)      # (tb, C)
    mx = jnp.max(x, axis=-1).astype(jnp.float32)                   # (tb, C)

    # Shared MLP gate (tiny; contracts over all C, hence fused per batch row).
    w1t = w1t_ref[...]
    w2t = w2t_ref[...]
    h_avg = jnp.maximum(jnp.dot(avg, w1t, preferred_element_type=jnp.float32), 0.0)
    h_max = jnp.maximum(jnp.dot(mx, w1t, preferred_element_type=jnp.float32), 0.0)
    g = (jnp.dot(h_avg, w2t, preferred_element_type=jnp.float32)
         + jnp.dot(h_max, w2t, preferred_element_type=jnp.float32))
    y = jax.nn.sigmoid(g)                                          # (tb, C) f32

    # Rescale in f32; single down-cast at the store.
    o_ref[...] = (x * y[:, :, None]).astype(o_ref.dtype)


def _pool_kernel(x_ref, avg_ref, mx_ref):
    # x_ref: (tb, tc, HW) -> avg_ref / mx_ref: (tb, tc) f32
    x = x_ref[...]
    hw = x.shape[-1]
    avg_ref[...] = jnp.sum(x, axis=-1, dtype=jnp.float32) * (1.0 / hw)
    mx_ref[...] = jnp.max(x, axis=-1).astype(jnp.float32)


def _scale_kernel(x_ref, y_ref, o_ref):
    # Pure load -> broadcast-mul -> store.  y_ref is the precomputed f32 gate.
    x = x_ref[...]
    o_ref[...] = (x * y_ref[...][:, :, None]).astype(o_ref.dtype)


# ---------------------------------------------------------------------------
# Wrapper.
# ---------------------------------------------------------------------------
def channel_attention(x, w1, w2, *, force_two_pass=False):
    """CBAM channel attention.

    x : (B, C, H, W); w1: (C//r, C) = fc1.weight; w2: (C, C//r) = fc2.weight.
    """
    B, C, H, W = x.shape
    HW = H * W
    C_red = w1.shape[0]
    itemsize = x.dtype.itemsize

    x3 = x.reshape(B, C, HW)
    # Pre-transpose once at trace time -> plain (M,K)x(K,N) matmuls.
    w1t = jnp.transpose(w1).astype(jnp.float32)    # (C, C_red)
    w2t = jnp.transpose(w2).astype(jnp.float32)    # (C_red, C)

    vmem_limit = _vmem_limit_bytes()

    # ---------------- Fused single-pass path (1 read + 1 write of x) -------
    fused_tb = None if force_two_pass else _choose_fused_batch_tile(
        B, C, HW, itemsize, vmem_limit)
    if fused_tb is not None:
        nb = B // fused_tb
        out3 = pl.pallas_call(
            _fused_kernel,
            grid_spec=pltpu.PrefetchScalarGridSpec(
                num_scalar_prefetch=0,
                grid=(nb,),
                in_specs=[
                    pl.BlockSpec((fused_tb, C, HW), lambda i: (i, 0, 0)),
                    pl.BlockSpec((C, C_red), lambda i: (0, 0)),   # resident
                    pl.BlockSpec((C_red, C), lambda i: (0, 0)),   # resident
                ],
                out_specs=pl.BlockSpec((fused_tb, C, HW), lambda i: (i, 0, 0)),
            ),
            out_shape=jax.ShapeDtypeStruct((B, C, HW), x.dtype),
            compiler_params=pltpu.CompilerParams(
                dimension_semantics=("parallel",),
                vmem_limit_bytes=vmem_limit,
            ),
        )(x3, w1t, w2t)
        return out3.reshape(B, C, H, W)

    # ---------------- Two-pass fallback -------------------------------------
    tb, tc = _choose_tiles(B, C, HW, itemsize)
    assert B % tb == 0 and (tb == B or tb % 8 == 0), (B, tb)
    assert C % tc == 0 and (tc == C or tc % 128 == 0), (C, tc)
    nb, nc = B // tb, C // tc

    cparams = pltpu.CompilerParams(
        dimension_semantics=("parallel", "parallel"),
        vmem_limit_bytes=vmem_limit,
    )

    # Pass 1: global avg / max pooling over HW, tiled over (B, C).
    avg, mx = pl.pallas_call(
        _pool_kernel,
        grid_spec=pltpu.PrefetchScalarGridSpec(
            num_scalar_prefetch=0,
            grid=(nb, nc),
            in_specs=[pl.BlockSpec((tb, tc, HW), lambda i, j: (i, j, 0))],
            out_specs=[
                pl.BlockSpec((tb, tc), lambda i, j: (i, j)),
                pl.BlockSpec((tb, tc), lambda i, j: (i, j)),
            ],
        ),
        out_shape=(
            jax.ShapeDtypeStruct((B, C), jnp.float32),
            jax.ShapeDtypeStruct((B, C), jnp.float32),
        ),
        compiler_params=cparams,
    )(x3)

    # Gate MLP hoisted out of the kernels: a (2B,C)x(C,C/r)x(C/r,C) micro-
    # matmul; plain jnp / XLA is the right tool at this size.
    pooled = jnp.concatenate([avg, mx], axis=0)                  # (2B, C) f32
    h = jnp.maximum(pooled @ w1t, 0.0)                           # (2B, C_red)
    g = h @ w2t                                                  # (2B, C)
    y = jax.nn.sigmoid(g[:B] + g[B:])                            # (B, C) f32

    # Pass 2: pure load -> broadcast-mul -> store, tiled over (B, C).
    out3 = pl.pallas_call(
        _scale_kernel,
        grid_spec=pltpu.PrefetchScalarGridSpec(
            num_scalar_prefetch=0,
            grid=(nb, nc),
            in_specs=[
                pl.BlockSpec((tb, tc, HW), lambda i, j: (i, j, 0)),
                pl.BlockSpec((tb, tc), lambda i, j: (i, j)),
            ],
            out_specs=pl.BlockSpec((tb, tc, HW), lambda i, j: (i, j, 0)),
        ),
        out_shape=jax.ShapeDtypeStruct((B, C, HW), x.dtype),
        compiler_params=cparams,
    )(x3, y)

    return out3.reshape(B, C, H, W)


# ---------------------------------------------------------------------------
# Pure-JAX reference (matches the PyTorch module).
# ---------------------------------------------------------------------------
def reference(x, w1, w2):
    avg = jnp.mean(x, axis=(2, 3))
    mx = jnp.max(x, axis=(2, 3))
    out_avg = jnp.maximum(avg @ w1.T, 0.0) @ w2.T
    out_max = jnp.maximum(mx @ w1.T, 0.0) @ w2.T
    y = jax.nn.sigmoid(out_avg + out_max)
    return x * y[:, :, None, None]


if __name__ == "__main__":
    # Small shapes consistent with the module (channels must exceed reduction).
    B, C, H, W = 2, 256, 16, 16
    reduction = 16
    C_red = C // reduction  # 16

    key = jax.random.PRNGKey(0)
    kx, k1, k2 = jax.random.split(key, 3)

    x = jax.random.normal(kx, (B, C, H, W), dtype=jnp.float32)

    # Deterministic init mimicking torch.nn.Linear default:
    # U(-1/sqrt(fan_in), 1/sqrt(fan_in)).
    b1 = 1.0 / jnp.sqrt(jnp.float32(C))
    b2 = 1.0 / jnp.sqrt(jnp.float32(C_red))
    w1 = jax.random.uniform(k1, (C_red, C), jnp.float32, -b1, b1)   # fc1.weight
    w2 = jax.random.uniform(k2, (C, C_red), jnp.float32, -b2, b2)   # fc2.weight

    ref = reference(x, w1, w2)

    # Auto path: fused single-pass kernel (slab fits VMEM at this size).
    out_fused = jax.block_until_ready(channel_attention(x, w1, w2))
    assert out_fused.shape == (B, C, H, W)
    assert jnp.allclose(out_fused, ref, atol=1e-5, rtol=1e-5)

    # Two-pass fallback path (pool kernel + hoisted jnp gate + scale kernel).
    out_2p = jax.block_until_ready(channel_attention(x, w1, w2, force_two_pass=True))
    assert out_2p.shape == (B, C, H, W)
    assert jnp.allclose(out_2p, ref, atol=1e-5, rtol=1e-5)

    print("KERNEL_OK")
</pallas_src>

<mosaic_0001>
module attributes {stable_mosaic.version = 11 : i64} {
  func.func @_fused_kernel(%arg0: i32, %arg1: memref<1x256x256xf32, #tpu.memory_space<vmem>>, %arg2: memref<256x16xf32, #tpu.memory_space<vmem>>, %arg3: memref<16x256xf32, #tpu.memory_space<vmem>>, %arg4: memref<1x256x256xf32, #tpu.memory_space<vmem>>) attributes {dimension_semantics = [#tpu.dimension_semantics<parallel>], iteration_bounds = array<i64: 2>, scalar_prefetch = 0 : i64, scratch_operands = 0 : i64, tpu.core_type = #tpu.core_type<tc>, window_params = [{transform_indices = @transform_0, window_bounds = array<i64: 1, 256, 256>}, {pipeline_mode = #tpu.pipeline_mode<synchronous>, transform_indices = @transform_1, window_bounds = array<i64: 256, 16>}, {pipeline_mode = #tpu.pipeline_mode<synchronous>, transform_indices = @transform_2, window_bounds = array<i64: 16, 256>}, {transform_indices = @transform_3, window_bounds = array<i64: 1, 256, 256>}]} {
    %c0 = arith.constant 0 : index
    %c0_0 = arith.constant 0 : index
    %c0_1 = arith.constant 0 : index
    %0 = vector.load %arg1[%c0, %c0_0, %c0_1] : memref<1x256x256xf32, #tpu.memory_space<vmem>>, vector<1x256x256xf32>
    %cst = arith.constant dense<0.000000e+00> : vector<1x256xf32>
    %1 = vector.multi_reduction <add>, %0, %cst [2] : vector<1x256x256xf32> to vector<1x256xf32>
    %cst_2 = arith.constant 3.906250e-03 : f32
    %2 = vector.broadcast %cst_2 : f32 to vector<1x256xf32>
    %3 = arith.mulf %1, %2 : vector<1x256xf32>
    %cst_3 = arith.constant dense<0xFF800000> : vector<1x256xf32>
    %4 = vector.multi_reduction <maximumf>, %0, %cst_3 [2] : vector<1x256x256xf32> to vector<1x256xf32>
    %c0_4 = arith.constant 0 : index
    %c0_5 = arith.constant 0 : index
    %5 = vector.load %arg2[%c0_4, %c0_5] : memref<256x16xf32, #tpu.memory_space<vmem>>, vector<256x16xf32>
    %c0_6 = arith.constant 0 : index
    %c0_7 = arith.constant 0 : index
    %6 = vector.load %arg3[%c0_6, %c0_7] : memref<16x256xf32, #tpu.memory_space<vmem>>, vector<16x256xf32>
    %cst_8 = arith.constant dense<0.000000e+00> : vector<1x16xf32>
    %7 = tpu.matmul %3, %5, %cst_8 {dimension_numbers = #tpu.dot_dimension_numbers<[1], [0], [0], [1], [0, 0, 1, 1], [], []>} : vector<1x256xf32>, vector<256x16xf32>, vector<1x16xf32> -> vector<1x16xf32>
    %cst_9 = arith.constant 0.000000e+00 : f32
    %8 = vector.broadcast %cst_9 : f32 to vector<1x16xf32>
    %9 = arith.maximumf %7, %8 : vector<1x16xf32>
    %cst_10 = arith.constant dense<0.000000e+00> : vector<1x16xf32>
    %10 = tpu.matmul %4, %5, %cst_10 {dimension_numbers = #tpu.dot_dimension_numbers<[1], [0], [0], [1], [0, 0, 1, 1], [], []>} : vector<1x256xf32>, vector<256x16xf32>, vector<1x16xf32> -> vector<1x16xf32>
    %cst_11 = arith.constant 0.000000e+00 : f32
    %11 = vector.broadcast %cst_11 : f32 to vector<1x16xf32>
    %12 = arith.maximumf %10, %11 : vector<1x16xf32>
    %cst_12 = arith.constant dense<0.000000e+00> : vector<1x256xf32>
    %13 = tpu.matmul %9, %6, %cst_12 {dimension_numbers = #tpu.dot_dimension_numbers<[1], [0], [0], [1], [0, 0, 1, 1], [], []>} : vector<1x16xf32>, vector<16x256xf32>, vector<1x256xf32> -> vector<1x256xf32>
    %cst_13 = arith.constant dense<0.000000e+00> : vector<1x256xf32>
    %14 = tpu.matmul %12, %6, %cst_13 {dimension_numbers = #tpu.dot_dimension_numbers<[1], [0], [0], [1], [0, 0, 1, 1], [], []>} : vector<1x16xf32>, vector<16x256xf32>, vector<1x256xf32> -> vector<1x256xf32>
    %15 = arith.addf %13, %14 : vector<1x256xf32>
    %16 = arith.negf %15 : vector<1x256xf32>
    %17 = math.exp %16 : vector<1x256xf32>
    %cst_14 = arith.constant 1.000000e+00 : f32
    %18 = vector.broadcast %cst_14 : f32 to vector<1x256xf32>
    %19 = arith.addf %18, %17 : vector<1x256xf32>
    %20 = arith.divf %18, %19 : vector<1x256xf32>
    %21 = vector.shape_cast %20 : vector<1x256xf32> to vector<1x256x1xf32>
    %22 = vector.broadcast %21 : vector<1x256x1xf32> to vector<1x256x256xf32>
    %23 = arith.mulf %0, %22 : vector<1x256x256xf32>
    %c0_15 = arith.constant 0 : index
    %c0_16 = arith.constant 0 : index
    %c0_17 = arith.constant 0 : index
    %24 = vector.load %arg4[%c0_15, %c0_16, %c0_17] : memref<1x256x256xf32, #tpu.memory_space<vmem>>, vector<1x256x256xf32>
    tpu.vector_store %arg4[%c0_15, %c0_16, %c0_17], %23 {strides = array<i32>} : memref<1x256x256xf32, #tpu.memory_space<vmem>>, vector<1x256x256xf32>,
    return
  }
  func.func @transform_0(%arg0: i32) -> (i32, i32, i32) {
    %c0_i32 = arith.constant 0 : i32
    %c0_i32_0 = arith.constant 0 : i32
    %c0_i32_1 = arith.constant 0 : i32
    return %arg0, %c0_i32, %c0_i32_0 : i32, i32, i32
  }
  func.func @transform_1(%arg0: i32) -> (i32, i32) {
    %c0_i32 = arith.constant 0 : i32
    %c0_i32_0 = arith.constant 0 : i32
    %c0_i32_1 = arith.constant 0 : i32
    return %c0_i32, %c0_i32_0 : i32, i32
  }
  func.func @transform_2(%arg0: i32) -> (i32, i32) {
    %c0_i32 = arith.constant 0 : i32
    %c0_i32_0 = arith.constant 0 : i32
    %c0_i32_1 = arith.constant 0 : i32
    return %c0_i32, %c0_i32_0 : i32, i32
  }
  func.func @transform_3(%arg0: i32) -> (i32, i32, i32) {
    %c0_i32 = arith.constant 0 : i32
    %c0_i32_0 = arith.constant 0 : i32
    %c0_i32_1 = arith.constant 0 : i32
    return %arg0, %c0_i32, %c0_i32_0 : i32, i32, i32
  }
}

</mosaic_0001>

<bundles_post_ra>
// kernel: tpu_custom_call.1
= control target key start
LH: loop header
LB: loop body
LE: loop exit
PB: predicated region body
PF: predicated region fallthrough
CT: control target
= control target key end

     0   :  { %8 = vsyncpa [#allocation3], 0  ;;  %s2744_s0 = inlined_call_operand.hbm [shape: f32[2,256,256], index: 0, kind: input, shape index: {}]   ;;  %s2745_s1 = inlined_call_operand.vmem [shape: f32[256,16], index: 1, kind: input, shape index: {}]   ;;  %s2746_s2 = inlined_call_operand.vmem [shape: f32[16,256], index: 2, kind: input, shape index: {}]   ;;  %s2747_s3 = inlined_call_operand.hbm [shape: f32[2,256,256], index: 3, kind: output, shape index: {}]  }
   0x1   :  { %10 = vsyncpa [#allocation3 + $0x1], 0 }
   0x2   :  { %11 = vsyncpa [#allocation4], 0 }
   0x3   :  { %13 = vsyncpa [#allocation4 + $0x1], 0  ;;  %s1993_s12 = smov 0   ;;  %s1995_s13 = smov 0  }
   0x4   :  { %s1997_s14 = smov 0   ;;  %s1999_s15 = smov 0  }
   0x5 LB: > { %s2014_s16 = sadd.s32 4294967295, %s1964_s15   ;;  %s1581_s17 = sadd.s32 4294967294, %s1964_s15   ;;  %s1964_s15 = sphi %s1999_s15, %s2760_s15   ;;  %s1960_s14 = sphi %s1997_s14, %s2759_s14   ;;  %s1956_s13 = sphi %s1995_s13, %s2758_s13   ;;  %s1952_s12 = sphi %s1993_s12, %s2757_s12  }
   0x6   : > { %s2018_s18 = sadd.s32 1, %s1964_s15   ;;  %s26_s19 = sadd.s32 1, %s1960_s14 }
   0x7   : > { %s23_s20 = ssub.s32 %s1964_s15, %s2018_s18  ;;  %p33_p0 = scmp.ne.s32.totalorder %s1960_s14, %s1956_s13 }
   0x8   : > { %p24_p1 = scmp.eq.s32.totalorder %s23_s20, 0  ;;  %p34_p2 = scmp.eq.s32.totalorder %s1964_s15, 0 }
   0x9   : > { %p39_p3 = scmp.ne.s32.totalorder %s1956_s13, %s1952_s12  ;;  %p40_p4 = scmp.eq.s32.totalorder %s2014_s16, 0 }
   0xa   : > { %s2030_s21 = scalar_select %p24_p1, %s1960_s14, %s26_s19  }
   0xb   : > { %p2032_p5 = por %p34_p2, %p33_p0  ;;  %p2036_p6 = por %p40_p4, %p39_p3 }
   0xc   : > { %p105_p7 = scmp.eq.s32.totalorder %s2014_s16, 1  ;;  %p111_p8 = scmp.eq.s32.totalorder %s1581_s17, 1 }
   0xd   : > { %p1757_p10 = scmp.lt.s32.totalorder %s1964_s15, 2  ;;  %s137_s26 = sand.u32 1, %s1960_s14  }
   0xe   : > { %p2043_p11 = por %p105_p7, %p33_p0  ;;  %p2047_p12 = por %p111_p8, %p39_p3 }
   0xf   : > { %s1599_s27 = sshll.u32 %s1964_s15, 13  ;;  %s1584_s28 = sshll.u32 %s137_s26, 9 }
  0x10   : > { %s2751_s24 = scalar_select %p2043_p11, 1, 0 }
  0x11   : > { %s2752_s25 = scalar_select %p2047_p12, 1, 0 }
  0x12   : > { %s2056_s4 = scalar_lea.hbm %s2744_s0, %s1599_s27  ;;  %s141_s5 = scalar_lea.vmem [#allocation2], %s1584_s28 }
  0x13   : > { %s148_s6 = sshll.u32 %s141_s5, 4  ;;  %p2060_p13 = pnand %p1757_p10, %p2032_p5  ;;  %s2064_s6 = int_to_ptr.vmem [resolvable:$true] %s148_s6 }
  0x14   : > { %s2066_s8 = scalar_lea.sflag [#allocation3], %s137_s26  ;;  %s1868_s9 = scalar_lea.hbm %s2056_s4, 8192 }
  0x15   : > { %p1869_p0 = scmp.ne.s32.totalorder %s2056_s4, %s1868_s9  ;;  %p1870_p1 = pneg %p2060_p13 }
  0x16   : > { %s1873_s17 = scalar_lea.hbm %s2744_s0, 16384  ;;  %p1874_p4 = scmp.lt.u32.totalorder %s2056_s4, %s2744_s0 }
  0x17   : > { %p1871_p2 = pnand %p1870_p1, %p1869_p0  ;;  %p1875_p5 = scmp.lt.u32.totalorder %s1873_s17, %s1868_s9 }
  0x18   : > { %p1877_p8 = scmp.lt.u32.totalorder %s1868_s9, %s2056_s4 }
  0x19   : > { %p1872_p3 = pneg %p1871_p2  ;;  %p1876_p7 = por %p1875_p5, %p1874_p4 }
  0x1b   : > { %p1878_p10 = por %p1877_p8, %p1876_p7 }
  0x1d   : > { %p1879_p9 = pnand %p1878_p10, %p1872_p3 }
  0x1f   : > { %1882 = shalt.err (!%p1879_p9)
}
  0x20   : > { %s1883_s22 = scalar_lea.vmem %s2064_s6, 8192  ;;  %s1966_s26 = smov [#allocation2]  }
  0x21   : > { %p1884_p0 = scmp.ne.s32.totalorder %s2064_s6, %s1883_s22  ;;  %s1888_s27 = sshll.u32 %s1966_s26, 4  ;;  %s1889_s27 = int_to_ptr.vmem [resolvable:$false] %s1888_s27 }
  0x22   : > { %s1890_s28 = scalar_lea.vmem %s1889_s27, 16384  ;;  %p1891_p11 = scmp.lt.s32.totalorder %s2064_s6, %s1889_s27 }
  0x23   : > { %p1886_p2 = pnand %p1884_p0, %p1870_p1  ;;  %p1892_p4 = scmp.lt.s32.totalorder %s1890_s28, %s1883_s22 }
  0x25   : > { %p1887_p12 = pneg %p1886_p2  ;;  %p1893_p5 = por %p1892_p4, %p1891_p11 }
  0x27   : > { %p1894_p7 = pnand %p1893_p5, %p1887_p12 }
  0x29   : > { %1897 = shalt.err (!%p1894_p7)
}
  0x2a   : > { %s1967_s29 = smov 256   ;;  %s1968_s30 = smov 16  }
  0x2b   : > { %1752 = dma.hbm_to_vmem [thread:$0]  (!%p2060_p13), %s2056_s4, 8192, %s2064_s6, %s2066_s8, %s1967_s29, %s1967_s29, %s1968_s30  }
  0x2c   : > { %p1587_p9 = scmp.ge.s32.totalorder %s1964_s15, 1  ;;  %p156_p1 = scmp.lt.s32.totalorder %s1964_s15, 3 }
  0x2e   : > { %p157_p3 = pnand %p1587_p9, %p156_p1 }
  0x2f   : > { %s2097_s5 = sand.u32 (!%p157_p3), 1, %s1956_s13  }
  0x30   : > { %160 = sbr.rel (%p157_p3) target bundleno = 984 (0x3d8), region = 32  ;;  %s1588_s9 = sshll.u32 (!%p157_p3), %s2097_s5, 9 }
  0x31   : > { %s163_s10 = scalar_lea.sflag (!%p157_p3), [#allocation3], %s2097_s5  ;;  %s2103_s11 = scalar_lea.vmem (!%p157_p3), [#allocation2], %s1588_s9 }
  0x37   : > { %1943 = dma.done.wait (%p2036_p6), %s163_s10, 8192  }
  0x38   : > { %1945 = vsyncadd (%p2036_p6), %s163_s10, 4294959104  ;;  %v221_v0 = vld [vmem:[%s2103_s11 + $0x100] sm:$0xff]  ;;  %v222_v1 = vld [vmem:[%s2103_s11 + $0x108] sm:$0xff]  ;;  %vm556_vm0 = vcmask 130112   ;;  %vm563_vm1 = vcmask 195712   ;;  %vm570_vm2 = vcmask 261312  }
  0x39   : > { %v189_v2 = vld [vmem:[%s2103_s11] sm:$0xff]  ;;  %v301_v3 = vadd.f32 %v222_v1, %v221_v0  ;;  %v190_v4 = vld [vmem:[%s2103_s11 + $0x8] sm:$0xff]  ;;  %v223_v5 = vld [vmem:[%s2103_s11 + $0x110] sm:$0xff]  ;;  %v429_v21 = vmax.f32 %v221_v0, %v222_v1  ;;  %vm577_vm3 = vcmask 326912   ;;  %vm584_vm4 = vcmask 392512   ;;  %s2567_s29 = scalar_lea.vmem [#allocation5], %s1588_s9 }
  0x3a   : > { %v224_v6 = vld [vmem:[%s2103_s11 + $0x118] sm:$0xff]  ;;  %v253_v7 = vadd.f32 %v190_v4, %v189_v2  ;;  %v191_v8 = vld [vmem:[%s2103_s11 + $0x10] sm:$0xff]  ;;  %v225_v12 = vld [vmem:[%s2103_s11 + $0x120] sm:$0xff]  ;;  %v381_v29 = vmax.f32 %v189_v2, %v190_v4  ;;  %vm591_vm5 = vcmask 458112   ;;  %vm598_vm6 = vcmask 523712   ;;  %s1600_s9 = sshll.u32 %s2014_s16, 13 }
  0x3b   : > { %v192_v9 = vld [vmem:[%s2103_s11 + $0x18] sm:$0xff]  ;;  %302 = vadd.xlane.f32.xlu0 %v301_v3  ;;  %v304_v10 = vadd.f32 %v224_v6, %v223_v5  ;;  %v226_v13 = vld [vmem:[%s2103_s11 + $0x128] sm:$0xff]  ;;  %v193_v14 = vld [vmem:[%s2103_s11 + $0x20] sm:$0xff]  ;;  %v432_v24 = vmax.f32 %v223_v5, %v224_v6  ;;  %vm605_vm7 = vcmask 589312   ;;  %vm612_vm8 = vcmask 654912   ;;  %s1508_s30 = sshll.u32 %s2567_s29, 4  ;;  %s2694_s4 = scalar_lea.hbm %s2747_s3, %s1600_s9  ;;  %s2696_s30 = int_to_ptr.vmem [resolvable:$true] %s1508_s30 }
  0x3c   : > { %254 = vadd.xlane.f32.xlu1 %v253_v7  ;;  %v256_v11 = vadd.f32 %v192_v9, %v191_v8  ;;  %v194_v15 = vld [vmem:[%s2103_s11 + $0x28] sm:$0xff]  ;;  %v307_v16 = vadd.f32 %v226_v13, %v225_v12  ;;  %v227_v18 = vld [vmem:[%s2103_s11 + $0x130] sm:$0xff]  ;;  %v228_v19 = vld [vmem:[%s2103_s11 + $0x138] sm:$0xff]  ;;  %v384_v30 = vmax.f32 %v191_v8, %v192_v9  ;;  %v435_v31 = vmax.f32 %v225_v12, %v226_v13  ;;  %s1495_s16 = scalar_lea.sflag [#allocation4], %s2097_s5  ;;  %s1898_s6 = scalar_lea.vmem %s2696_s30, 8192 }
  0x3d   : > { %v259_v17 = vadd.f32 %v194_v15, %v193_v14  ;;  %v310_v20 = vadd.f32 %v228_v19, %v227_v18  ;;  %v195_v22 = vld [vmem:[%s2103_s11 + $0x30] sm:$0xff]  ;;  %v196_v23 = vld [vmem:[%s2103_s11 + $0x38] sm:$0xff]  ;;  %v229_v26 = vld [vmem:[%s2103_s11 + $0x140] sm:$0xff]  ;;  %v387_v38 = vmax.f32 %v193_v14, %v194_v15  ;;  %v438_v39 = vmax.f32 %v227_v18, %v228_v19  ;;  %p1899_p6 = scmp.ne.s32.totalorder %s2696_s30, %s1898_s6  ;;  %p2754_p11 = scmp.ne.s32.totalorder %s2751_s24, 0 }
  0x3e   : > { %v262_v25 = vadd.f32 %v196_v23, %v195_v22  ;;  %v230_v27 = vld [vmem:[%s2103_s11 + $0x148] sm:$0xff]  ;;  %v197_v32 = vld [vmem:[%s2103_s11 + $0x40] sm:$0xff]  ;;  %v231_v34 = vld [vmem:[%s2103_s11 + $0x150] sm:$0xff]  ;;  %v390_v46 = vmax.f32 %v195_v22, %v196_v23  ;;  %vm619_vm9 = vcmask 720512   ;;  %vm626_vm10 = vcmask 786112   ;;  %s1970_s7 = smov [#allocation5]  }
  0x3f   : > { %305 = vadd.xlane.f32.xlu0 %v304_v10  ;;  %v313_v28 = vadd.f32 %v230_v27, %v229_v26  ;;  %v198_v33 = vld [vmem:[%s2103_s11 + $0x48] sm:$0xff]  ;;  %v232_v35 = vld [vmem:[%s2103_s11 + $0x158] sm:$0xff]  ;;  %v199_v40 = vld [vmem:[%s2103_s11 + $0x50] sm:$0xff]  ;;  %v441_v47 = vmax.f32 %v229_v26, %v230_v27  ;;  %vm633_vm11 = vcmask 851712   ;;  %vm640_vm12 = vcmask 917312   ;;  %p1900_p12 = pnand %p1899_p6, %p2754_p11  ;;  %s1902_s8 = sshll.u32 %s1970_s7, 4  ;;  %s1903_s8 = int_to_ptr.vmem [resolvable:$false] %s1902_s8 }
  0x40   : > { %257 = vadd.xlane.f32.xlu1 %v256_v11  ;;  %v265_v36 = vadd.f32 %v198_v33, %v197_v32  ;;  %v316_v37 = vadd.f32 %v232_v35, %v231_v34  ;;  %v200_v41 = vld [vmem:[%s2103_s11 + $0x58] sm:$0xff]  ;;  %v233_v42 = vld [vmem:[%s2103_s11 + $0x160] sm:$0xff]  ;;  %v234_v43 = vld [vmem:[%s2103_s11 + $0x168] sm:$0xff]  ;;  %v393_v54 = vmax.f32 %v197_v32, %v198_v33  ;;  %v444_v55 = vmax.f32 %v231_v34, %v232_v35  ;;  %s1904_s17 = scalar_lea.vmem %s1903_s8, 16384  ;;  %p1905_p8 = scmp.lt.s32.totalorder %s2696_s30, %s1903_s8 }
  0x41   : > { %v268_v44 = vadd.f32 %v200_v41, %v199_v40  ;;  %v319_v45 = vadd.f32 %v234_v43, %v233_v42  ;;  %v201_v48 = vld [vmem:[%s2103_s11 + $0x60] sm:$0xff]  ;;  %v202_v49 = vld [vmem:[%s2103_s11 + $0x68] sm:$0xff]  ;;  %v235_v50 = vld [vmem:[%s2103_s11 + $0x170] sm:$0xff]  ;;  %v396_v62 = vmax.f32 %v199_v40, %v200_v41  ;;  %v447_v63 = vmax.f32 %v233_v42, %v234_v43  ;;  %p1901_p13 = pneg %p1900_p12  ;;  %p1906_p10 = scmp.lt.s32.totalorder %s1904_s17, %s1898_s6 }
  0x42   : > { %v236_v51 = vld [vmem:[%s2103_s11 + $0x178] sm:$0xff]  ;;  %v271_v52 = vadd.f32 %v202_v49, %v201_v48  ;;  %v203_v56 = vld [vmem:[%s2103_s11 + $0x70] sm:$0xff]  ;;  %v237_v58 = vld [vmem:[%s2103_s11 + $0x180] sm:$0xff]  ;;  %v399_v6 = vmax.f32 %v201_v48, %v202_v49  ;;  %vm647_vm13 = vcmask 982912   ;;  %vm654_vm14 = vcmask 1048512  }
  0x43   : > { %308 = vadd.xlane.f32.xlu0 %v307_v16  ;;  %v322_v53 = vadd.f32 %v236_v51, %v235_v50  ;;  %v204_v57 = vld [vmem:[%s2103_s11 + $0x78] sm:$0xff]  ;;  %v238_v59 = vld [vmem:[%s2103_s11 + $0x188] sm:$0xff]  ;;  %v205_v0 = vld [vmem:[%s2103_s11 + $0x80] sm:$0xff]  ;;  %v450_v7 = vmax.f32 %v235_v50, %v236_v51  ;;  %vm1071_vm15 = vcmask 130048   ;;  %p1907_p0 = por %p1906_p10, %p1905_p8 }
  0x44   : > { %260 = vadd.xlane.f32.xlu1 %v259_v17  ;;  %v274_v60 = vadd.f32 %v204_v57, %v203_v56  ;;  %v325_v61 = vadd.f32 %v238_v59, %v237_v58  ;;  %v206_v1 = vld [vmem:[%s2103_s11 + $0x88] sm:$0xff]  ;;  %v239_v2 = vld [vmem:[%s2103_s11 + $0x190] sm:$0xff]  ;;  %v240_v3 = vld [vmem:[%s2103_s11 + $0x198] sm:$0xff]  ;;  %v402_v14 = vmax.f32 %v203_v56, %v204_v57  ;;  %v453_v15 = vmax.f32 %v237_v58, %v238_v59 }
  0x45   : > { %v277_v4 = vadd.f32 %v206_v1, %v205_v0  ;;  %v328_v5 = vadd.f32 %v240_v3, %v239_v2  ;;  %v207_v8 = vld [vmem:[%s2103_s11 + $0x90] sm:$0xff]  ;;  %v208_v9 = vld [vmem:[%s2103_s11 + $0x98] sm:$0xff]  ;;  %v241_v10 = vld [vmem:[%s2103_s11 + $0x1a0] sm:$0xff]  ;;  %v405_v22 = vmax.f32 %v205_v0, %v206_v1  ;;  %v456_v23 = vmax.f32 %v239_v2, %v240_v3  ;;  %p1908_p2 = pnand %p1907_p0, %p1901_p13 }
  0x46   : > { %v242_v11 = vld [vmem:[%s2103_s11 + $0x1a8] sm:$0xff]  ;;  %v280_v12 = vadd.f32 %v208_v9, %v207_v8  ;;  %v209_v16 = vld [vmem:[%s2103_s11 + $0xa0] sm:$0xff]  ;;  %v243_v18 = vld [vmem:[%s2103_s11 + $0x1b0] sm:$0xff] }
  0x47   : > { %311 = vadd.xlane.f32.xlu0 %v310_v20  ;;  %v331_v13 = vadd.f32 %v242_v11, %v241_v10  ;;  %v210_v17 = vld [vmem:[%s2103_s11 + $0xa8] sm:$0xff]  ;;  %v244_v19 = vld [vmem:[%s2103_s11 + $0x1b8] sm:$0xff]  ;;  %v245_v26 = vld [vmem:[%s2103_s11 + $0x1c0] sm:$0xff] }
  0x48   : > { %430 = vmax.xlane.f32.xlu1 %v429_v21  ;;  %v283_v20 = vadd.f32 %v210_v17, %v209_v16  ;;  %v334_v21 = vadd.f32 %v244_v19, %v243_v18  ;;  %v246_v27 = vld [vmem:[%s2103_s11 + $0x1c8] sm:$0xff]  ;;  %v2160_v32 = vld [vmem:[%s2103_s11 + $0xc0] sm:$0xff]  ;;  %v2166_v34 = vld [vmem:[%s2103_s11 + $0x1d0] sm:$0xff] }
  0x49   : > { %v2163_v33 = vld [vmem:[%s2103_s11 + $0xc8] sm:$0xff]  ;;  %v2169_v35 = vld [vmem:[%s2103_s11 + $0x1d8] sm:$0xff]  ;;  %v2176_v40 = vld [vmem:[%s2103_s11 + $0xd0] sm:$0xff]  ;;  %v465_v49 = vmax.f32 %v245_v26, %v246_v27 }
  0x4a   : > { %v2179_v41 = vld [vmem:[%s2103_s11 + $0xd8] sm:$0xff]  ;;  %v2182_v42 = vld [vmem:[%s2103_s11 + $0x1e0] sm:$0xff]  ;;  %v2185_v43 = vld [vmem:[%s2103_s11 + $0x1e8] sm:$0xff]  ;;  %v417_v2 = vmax.f32 %v2160_v32, %v2163_v33 }
  0x4b   : > { %433 = vmax.xlane.f32.xlu0 %v432_v24  ;;  %v211_v24 = vld [vmem:[%s2103_s11 + $0xb0] sm:$0xff]  ;;  %v2195_v48 = vld [vmem:[%s2103_s11 + $0xe8] sm:$0xff]  ;;  %v493_v51 = vld [vmem:[%s2745_s1 + $0x80] sm:$0xff] }
  0x4c   : > { %263 = vadd.xlane.f32.xlu1 %v262_v25  ;;  %v212_v25 = vld [vmem:[%s2103_s11 + $0xb8] sm:$0xff]  ;;  %v2198_v50 = vld [vmem:[%s2103_s11 + $0x1f0] sm:$0xff]  ;;  %v478_v56 = vld [vmem:[%s2745_s1 + $0x8] sm:$0xff] }
  0x4d   : > { %v480_v0 = vld [vmem:[%s2745_s1 + $0x18] sm:$0xff]  ;;  %v219_v3 = vld [vmem:[%s2103_s11 + $0xf0] sm:$0xff] }
  0x4f   : > { %314 = vadd.xlane.f32.xlu0 %v313_v28  ;;  %v286_v28 = vadd.f32 %v212_v25, %v211_v24 }
  0x50   : > { %382 = vmax.xlane.f32.xlu1 %v381_v29  ;;  %v337_v29 = vadd.f32 %v246_v27, %v245_v26  ;;  %v486_v26 = vld [vmem:[%s2745_s1 + $0x48] sm:$0xff] }
  0x53   : > { %385 = vmax.xlane.f32.xlu0 %v384_v30  ;;  %v408_v30 = vmax.f32 %v207_v8, %v208_v9  ;;  %v481_v9 = vld [vmem:[%s2745_s1 + $0x20] sm:$0xff] }
  0x54   : > { %436 = vmax.xlane.f32.xlu1 %v435_v31  ;;  %v459_v31 = vmax.f32 %v241_v10, %v242_v11  ;;  %v482_v10 = vld [vmem:[%s2745_s1 + $0x28] sm:$0xff] }
  0x55   : > { %v1681_v11 = vpack.c.bf16 %v482_v10, %v481_v9 }
  0x57   : > { %266 = vadd.xlane.f32.xlu0 %v265_v36  ;;  %v289_v36 = vadd.f32 %v2163_v33, %v2160_v32  ;;  %v487_v33 = vld [vmem:[%s2745_s1 + $0x50] sm:$0xff] }
  0x58   : > { %317 = vadd.xlane.f32.xlu1 %v316_v37  ;;  %v340_v37 = vadd.f32 %v2169_v35, %v2166_v34 }
  0x5b   : > { %388 = vmax.xlane.f32.xlu0 %v387_v38  ;;  %v411_v38 = vmax.f32 %v209_v16, %v210_v17  ;;  %v483_v17 = vld [vmem:[%s2745_s1 + $0x30] sm:$0xff] }
  0x5c   : > { %439 = vmax.xlane.f32.xlu1 %v438_v39  ;;  %v462_v39 = vmax.f32 %v243_v18, %v244_v19  ;;  %v484_v18 = vld [vmem:[%s2745_s1 + $0x38] sm:$0xff] }
  0x5d   : > { %v1685_v19 = vpack.c.bf16 %v484_v18, %v483_v17 }
  0x5f   : > { %269 = vadd.xlane.f32.xlu0 %v268_v44  ;;  %v292_v44 = vadd.f32 %v2179_v41, %v2176_v40 }
  0x60   : > { %320 = vadd.xlane.f32.xlu1 %v319_v45  ;;  %v343_v45 = vadd.f32 %v2185_v43, %v2182_v42 }
  0x63   : > { %391 = vmax.xlane.f32.xlu0 %v390_v46  ;;  %v414_v46 = vmax.f32 %v211_v24, %v212_v25  ;;  %v485_v25 = vld [vmem:[%s2745_s1 + $0x40] sm:$0xff] }
  0x64   : > { %442 = vmax.xlane.f32.xlu1 %v441_v47  ;;  %v2192_v47 = vld [vmem:[%s2103_s11 + $0xe0] sm:$0xff]  ;;  %v1689_v27 = vpack.c.bf16 %v486_v26, %v485_v25 }
  0x65   : > { %v295_v58 = vadd.f32 %v2195_v48, %v2192_v47 }
  0x67   : > { %272 = vadd.xlane.f32.xlu0 %v271_v52  ;;  %v494_v52 = vld [vmem:[%s2745_s1 + $0x88] sm:$0xff] }
  0x68   : > { %323 = vadd.xlane.f32.xlu1 %v322_v53  ;;  %v2207_v53 = vld [vmem:[%s2103_s11 + $0x1f8] sm:$0xff] }
  0x69   : > { %v346_v59 = vadd.f32 %v2207_v53, %v2198_v50 }
  0x6b   : > { %394 = vmax.xlane.f32.xlu0 %v393_v54  ;;  %v1671_v54 = vpack.c.bf16 %v494_v52, %v493_v51 }
  0x6c   : > { %445 = vmax.xlane.f32.xlu1 %v444_v55  ;;  %v477_v55 = vld [vmem:[%s2745_s1] sm:$0xff] }
  0x6d   : > { %v1673_v57 = vpack.c.bf16 %v478_v56, %v477_v55  ;;  %1672 = vmatprep.subr.bf16.mxu0 %v1671_v54  ;;  %1704 = vmatprep.subr.bf16.mxu1 %v1671_v54 }
  0x6f   : > { %275 = vadd.xlane.f32.xlu0 %v274_v60  ;;  %1674 = vmatpush3.bf16.msra.mxu0 %v1673_v57  ;;  %v495_v60 = vld [vmem:[%s2745_s1 + $0x90] sm:$0xff] }
  0x70   : > { %326 = vadd.xlane.f32.xlu1 %v325_v61  ;;  %v496_v61 = vld [vmem:[%s2745_s1 + $0x98] sm:$0xff]  ;;  %1706 = vmatpush3.bf16.msra.mxu1 %v1673_v57 }
  0x73   : > { %397 = vmax.xlane.f32.xlu0 %v396_v62  ;;  %v1675_v62 = vpack.c.bf16 %v496_v61, %v495_v60 }
  0x74   : > { %448 = vmax.xlane.f32.xlu1 %v447_v63  ;;  %v479_v63 = vld [vmem:[%s2745_s1 + $0x10] sm:$0xff] }
  0x75   : > { %v1677_v1 = vpack.c.bf16 %v480_v0, %v479_v63  ;;  %1676 = vmatprep.subr.bf16.mxu0 %v1675_v62  ;;  %1708 = vmatprep.subr.bf16.mxu1 %v1675_v62 }
  0x77   : > { %278 = vadd.xlane.f32.xlu0 %v277_v4  ;;  %v468_v4 = vmax.f32 %v2166_v34, %v2169_v35  ;;  %1678 = vmatpush3.bf16.msra.mxu0 %v1677_v1  ;;  %v488_v34 = vld [vmem:[%s2745_s1 + $0x58] sm:$0xff] }
  0x78   : > { %329 = vadd.xlane.f32.xlu1 %v328_v5  ;;  %v220_v5 = vld [vmem:[%s2103_s11 + $0xf8] sm:$0xff]  ;;  %1710 = vmatpush3.bf16.msra.mxu1 %v1677_v1  ;;  %v1693_v35 = vpack.c.bf16 %v488_v34, %v487_v33 }
  0x7b   : > { %400 = vmax.xlane.f32.xlu0 %v399_v6  ;;  %v497_v6 = vld [vmem:[%s2745_s1 + $0xa0] sm:$0xff] }
  0x7c   : > { %451 = vmax.xlane.f32.xlu1 %v450_v7  ;;  %v498_v7 = vld [vmem:[%s2745_s1 + $0xa8] sm:$0xff] }
  0x7d   : > { %v1679_v8 = vpack.c.bf16 %v498_v7, %v497_v6 }
  0x7f   : > { %281 = vadd.xlane.f32.xlu0 %v280_v12  ;;  %v298_v12 = vadd.f32 %v220_v5, %v219_v3  ;;  %1680 = vmatprep.subr.bf16.mxu0 %v1679_v8 }
  0x80   : > { %332 = vadd.xlane.f32.xlu1 %v331_v13  ;;  %v420_v13 = vmax.f32 %v2176_v40, %v2179_v41  ;;  %1682 = vmatpush3.bf16.msra.mxu0 %v1681_v11  ;;  %v490_v40 = vld [vmem:[%s2745_s1 + $0x68] sm:$0xff] }
  0x81   : > { %1712 = vmatprep.subr.bf16.mxu1 %v1679_v8 }
  0x82   : > { %1714 = vmatpush3.bf16.msra.mxu1 %v1681_v11 }
  0x83   : > { %403 = vmax.xlane.f32.xlu0 %v402_v14  ;;  %v499_v14 = vld [vmem:[%s2745_s1 + $0xb0] sm:$0xff] }
  0x84   : > { %454 = vmax.xlane.f32.xlu1 %v453_v15  ;;  %v500_v15 = vld [vmem:[%s2745_s1 + $0xb8] sm:$0xff] }
  0x85   : > { %v1683_v16 = vpack.c.bf16 %v500_v15, %v499_v14 }
  0x87   : > { %284 = vadd.xlane.f32.xlu0 %v283_v20  ;;  %v471_v20 = vmax.f32 %v2182_v42, %v2185_v43  ;;  %1684 = vmatprep.subr.bf16.mxu0 %v1683_v16  ;;  %v507_v42 = vld [vmem:[%s2745_s1 + $0xf0] sm:$0xff]  ;;  %v508_v43 = vld [vmem:[%s2745_s1 + $0xf8] sm:$0xff] }
  0x88   : > { %335 = vadd.xlane.f32.xlu1 %v334_v21  ;;  %v423_v21 = vmax.f32 %v2192_v47, %v2195_v48  ;;  %1686 = vmatpush3.bf16.msra.mxu0 %v1685_v19  ;;  %v545_v48 = vlaneseq }
  0x89   : > { %1716 = vmatprep.subr.bf16.mxu1 %v1683_v16 }
  0x8a   : > { %1718 = vmatpush3.bf16.msra.mxu1 %v1685_v19 }
  0x8b   : > { %406 = vmax.xlane.f32.xlu0 %v405_v22  ;;  %v501_v22 = vld [vmem:[%s2745_s1 + $0xc0] sm:$0xff] }
  0x8c   : > { %457 = vmax.xlane.f32.xlu1 %v456_v23  ;;  %v502_v23 = vld [vmem:[%s2745_s1 + $0xc8] sm:$0xff] }
  0x8d   : > { %v1687_v24 = vpack.c.bf16 %v502_v23, %v501_v22 }
  0x8f   : > { %287 = vadd.xlane.f32.xlu0 %v286_v28  ;;  %v474_v28 = vmax.f32 %v2198_v50, %v2207_v53  ;;  %1688 = vmatprep.subr.bf16.mxu0 %v1687_v24  ;;  %v2319_v50 = vshrl.u32 %v545_v48, 7 }
  0x90   : > { %338 = vadd.xlane.f32.xlu1 %v337_v29  ;;  %v426_v29 = vmax.f32 %v219_v3, %v220_v5  ;;  %1690 = vmatpush3.bf16.msra.mxu0 %v1689_v27 }
  0x91   : > { %1720 = vmatprep.subr.bf16.mxu1 %v1687_v24 }
  0x92   : > { %1722 = vmatpush3.bf16.msra.mxu1 %v1689_v27 }
  0x93   : > { %409 = vmax.xlane.f32.xlu0 %v408_v30  ;;  %v503_v30 = vld [vmem:[%s2745_s1 + $0xd0] sm:$0xff] }
  0x94   : > { %460 = vmax.xlane.f32.xlu1 %v459_v31  ;;  %v504_v31 = vld [vmem:[%s2745_s1 + $0xd8] sm:$0xff] }
  0x95   : > { %v1691_v32 = vpack.c.bf16 %v504_v31, %v503_v30 }
  0x97   : > { %290 = vadd.xlane.f32.xlu0 %v289_v36  ;;  %1692 = vmatprep.subr.bf16.mxu0 %v1691_v32  ;;  %v505_v36 = vld [vmem:[%s2745_s1 + $0xe0] sm:$0xff] }
  0x98   : > { %341 = vadd.xlane.f32.xlu1 %v340_v37  ;;  %1694 = vmatpush3.bf16.msra.mxu0 %v1693_v35  ;;  %v506_v37 = vld [vmem:[%s2745_s1 + $0xe8] sm:$0xff] }
  0x99   : > { %1724 = vmatprep.subr.bf16.mxu1 %v1691_v32 }
  0x9a   : > { %1726 = vmatpush3.bf16.msra.mxu1 %v1693_v35 }
  0x9b   : > { %412 = vmax.xlane.f32.xlu0 %v411_v38  ;;  %v1695_v38 = vpack.c.bf16 %v506_v37, %v505_v36 }
  0x9c   : > { %463 = vmax.xlane.f32.xlu1 %v462_v39  ;;  %v489_v39 = vld [vmem:[%s2745_s1 + $0x60] sm:$0xff] }
  0x9d   : > { %v1697_v41 = vpack.c.bf16 %v490_v40, %v489_v39  ;;  %1696 = vmatprep.subr.bf16.mxu0 %v1695_v38  ;;  %1728 = vmatprep.subr.bf16.mxu1 %v1695_v38 }
  0x9f   : > { %293 = vadd.xlane.f32.xlu0 %v292_v44  ;;  %1698 = vmatpush3.bf16.msra.mxu0 %v1697_v41  ;;  %v1699_v44 = vpack.c.bf16 %v508_v43, %v507_v42 }
  0xa0   : > { %344 = vadd.xlane.f32.xlu1 %v343_v45  ;;  %v491_v45 = vld [vmem:[%s2745_s1 + $0x70] sm:$0xff]  ;;  %1730 = vmatpush3.bf16.msra.mxu1 %v1697_v41 }
  0xa1   : > { %1700 = vmatprep.subr.bf16.mxu0 %v1699_v44  ;;  %1732 = vmatprep.subr.bf16.mxu1 %v1699_v44 }
  0xa3   : > { %415 = vmax.xlane.f32.xlu0 %v414_v46  ;;  %v492_v46 = vld [vmem:[%s2745_s1 + $0x78] sm:$0xff] }
  0xa4   : > { %466 = vmax.xlane.f32.xlu1 %v465_v49  ;;  %v1701_v47 = vpack.c.bf16 %v492_v46, %v491_v45  ;;  %v2317_v49 = vand.u32 127, %v545_v48 }
  0xa6   : > { %1702 = vmatpush3.bf16.msra.mxu0 %v1701_v47  ;;  %1734 = vmatpush3.bf16.msra.mxu1 %v1701_v47  ;;  %v551_v51 = vadd.s32 4294967288, %v2317_v49  ;;  %v549_v54 = vsub.s32 %v2317_v49, %v2319_v50  ;;  %v558_v57 = vadd.s32 4294967280, %v2317_v49  ;;  %v579_v36 = vadd.s32 4294967256, %v2317_v49 }
  0xa7   : > { %296 = vadd.xlane.f32.xlu0 %v295_v58 }
  0xa8   : > { %347 = vadd.xlane.f32.xlu1 %v346_v59  ;;  %v554_v56 = vsub.s32 %v551_v51, %v2319_v50  ;;  %v561_v1 = vsub.s32 %v558_v57, %v2319_v50  ;;  %v2343_v45 = vsub.s32 %v579_v36, %v2319_v50  ;;  %v586_v36 = vadd.s32 4294967248, %v2317_v49 }
  0xab   : > { %418 = vmax.xlane.f32.xlu0 %v417_v2  ;;  %v565_v2 = vadd.s32 4294967272, %v2317_v49 }
  0xac   : > { %469 = vmax.xlane.f32.xlu1 %v468_v4 }
  0xaf   : > { %299 = vadd.xlane.f32.xlu0 %v298_v12  ;;  %v568_v12 = vsub.s32 %v565_v2, %v2319_v50 }
  0xb0   : > { %421 = vmax.xlane.f32.xlu1 %v420_v13 }
  0xb3   : > { %472 = vmax.xlane.f32.xlu0 %v471_v20  ;;  %v572_v20 = vadd.s32 4294967264, %v2317_v49 }
  0xb4   : > { %424 = vmax.xlane.f32.xlu1 %v423_v21 }
  0xb7   : > { %475 = vmax.xlane.f32.xlu0 %v474_v28  ;;  %v575_v28 = vsub.s32 %v572_v20, %v2319_v50 }
  0xb8   : > { %427 = vmax.xlane.f32.xlu1 %v426_v29 }
  0xc8   : > { %v303_v52 = vpop.xlane.xlu0 %302 }
  0xc9   : > { %v255_v53 = vpop.xlane.xlu1 %254  ;;  %v365_v55 = vmul.f32 0.00390625, %v303_v52 }
  0xca   : > { %v349_v58 = vmul.f32 0.00390625, %v255_v53 }
  0xcb   : > { %v659_v63 = vrot.slane %v365_v55, %v549_v54 }
  0xcc   : > { %v306_v59 = vpop.xlane.xlu0 %305  ;;  %v550_v3 = vrot.slane %v349_v58, %v549_v54 }
  0xcd   : > { %v366_v60 = vmul.f32 0.00390625, %v306_v59  ;;  %v258_v61 = vpop.xlane.xlu1 %257 }
  0xce   : > { %v350_v62 = vmul.f32 0.00390625, %v258_v61 }
  0xcf   : > { %v663_v0 = vrot.slane %v366_v60, %v554_v56 }
  0xd0   : > { %v555_v4 = vrot.slane %v350_v62, %v554_v56  ;;  %v309_v5 = vpop.xlane.xlu0 %308 }
  0xd1   : > { %v664_v6 = vsel %vm556_vm0, %v663_v0, %v659_v63  ;;  %v367_v7 = vmul.f32 0.00390625, %v309_v5  ;;  %v261_v8 = vpop.xlane.xlu1 %260 }
  0xd2   : > { %v557_v9 = vsel %vm556_vm0, %v555_v4, %v550_v3  ;;  %v351_v10 = vmul.f32 0.00390625, %v261_v8 }
  0xd3   : > { %v668_v11 = vrot.slane %v367_v7, %v561_v1 }
  0xd4   : > { %v562_v13 = vrot.slane %v351_v10, %v561_v1  ;;  %v312_v14 = vpop.xlane.xlu0 %311 }
  0xd5   : > { %v669_v15 = vsel %vm563_vm1, %v668_v11, %v664_v6  ;;  %v368_v16 = vmul.f32 0.00390625, %v312_v14  ;;  %v431_v17 = vpop.xlane.xlu1 %430 }
  0xd6   : > { %v564_v18 = vsel %vm563_vm1, %v562_v13, %v557_v9  ;;  %v922_v23 = vrot.slane %v431_v17, %v549_v54 }
  0xd7   : > { %v673_v19 = vrot.slane %v368_v16, %v568_v12 }
  0xd8   : > { %v434_v21 = vpop.xlane.xlu0 %433 }
  0xd9   : > { %v674_v22 = vsel %vm570_vm2, %v673_v19, %v669_v15  ;;  %v926_v24 = vrot.slane %v434_v21, %v554_v56  ;;  %v264_v25 = vpop.xlane.xlu1 %263 }
  0xda   : > { %v352_v26 = vmul.f32 0.00390625, %v264_v25 }
  0xdb   : > { %v927_v27 = vsel %vm556_vm0, %v926_v24, %v922_v23 }
  0xdc   : > { %v569_v29 = vrot.slane %v352_v26, %v568_v12  ;;  %v315_v30 = vpop.xlane.xlu0 %314 }
  0xdd   : > { %v369_v31 = vmul.f32 0.00390625, %v315_v30  ;;  %v383_v32 = vpop.xlane.xlu1 %382 }
  0xde   : > { %v571_v33 = vsel %vm570_vm2, %v569_v29, %v564_v18  ;;  %v843_v38 = vrot.slane %v383_v32, %v549_v54 }
  0xdf   : > { %v678_v34 = vrot.slane %v369_v31, %v575_v28 }
  0xe0   : > { %v386_v35 = vpop.xlane.xlu0 %385 }
  0xe1   : > { %v679_v37 = vsel %vm577_vm3, %v678_v34, %v674_v22  ;;  %v847_v39 = vrot.slane %v386_v35, %v554_v56  ;;  %v437_v40 = vpop.xlane.xlu1 %436 }
  0xe2   : > { %v931_v41 = vrot.slane %v437_v40, %v561_v1  ;;  %v607_v40 = vadd.s32 4294967224, %v2317_v49 }
  0xe3   : > { %v848_v42 = vsel %vm556_vm0, %v847_v39, %v843_v38  ;;  %v600_v38 = vadd.s32 4294967232, %v2317_v49 }
  0xe4   : > { %v932_v43 = vsel %vm563_vm1, %v931_v41, %v927_v27  ;;  %v267_v44 = vpop.xlane.xlu0 %266 }
  0xe5   : > { %v353_v46 = vmul.f32 0.00390625, %v267_v44  ;;  %v318_v47 = vpop.xlane.xlu1 %317 }
  0xe6   : > { %v370_v48 = vmul.f32 0.00390625, %v318_v47 }
  0xe7   : > { %v576_v51 = vrot.slane %v353_v46, %v575_v28  ;;  %v621_v46 = vadd.s32 4294967208, %v2317_v49 }
  0xe8   : > { %v683_v52 = vrot.slane %v370_v48, %v2343_v45  ;;  %v389_v53 = vpop.xlane.xlu0 %388  ;;  %v2408_v48 = vsub.s32 %v600_v38, %v2319_v50 }
  0xe9   : > { %v578_v54 = vsel %vm577_vm3, %v576_v51, %v571_v33  ;;  %v852_v55 = vrot.slane %v389_v53, %v561_v1  ;;  %v440_v56 = vpop.xlane.xlu1 %439  ;;  %v628_v51 = vadd.s32 4294967200, %v2317_v49 }
  0xea   : > { %v2348_v57 = vsel %vm584_vm4, %v683_v52, %v679_v37  ;;  %v936_v58 = vrot.slane %v440_v56, %v568_v12  ;;  %v593_v37 = vadd.s32 4294967240, %v2317_v49 }
  0xeb   : > { %v853_v59 = vsel %vm563_vm1, %v852_v55, %v848_v42  ;;  %v2400_v42 = vsub.s32 %v586_v36, %v2319_v50  ;;  %v635_v55 = vadd.s32 4294967192, %v2317_v49 }
  0xec   : > { %v937_v60 = vsel %vm570_vm2, %v936_v58, %v932_v43  ;;  %v270_v61 = vpop.xlane.xlu0 %269  ;;  %v614_v43 = vadd.s32 4294967216, %v2317_v49  ;;  %v2404_v44 = vsub.s32 %v593_v37, %v2319_v50 }
  0xed   : > { %v354_v62 = vmul.f32 0.00390625, %v270_v61  ;;  %v321_v63 = vpop.xlane.xlu1 %320 }
  0xee   : > { %v371_v47 = vmul.f32 0.00390625, %v321_v63  ;;  %v642_v63 = vadd.s32 4294967184, %v2317_v49 }
  0xef   : > { %v583_v0 = vrot.slane %v354_v62, %v2343_v45  ;;  %v2423_v62 = vsub.s32 %v621_v46, %v2319_v50 }
  0xf0   : > { %v392_v2 = vpop.xlane.xlu0 %391 }
  0xf1   : > { %v2354_v3 = vsel %vm584_vm4, %v583_v0, %v578_v54  ;;  %v857_v4 = vrot.slane %v392_v2, %v568_v12  ;;  %v443_v1 = vpop.xlane.xlu1 %442  ;;  %v2414_v54 = vsub.s32 %v607_v40, %v2319_v50  ;;  %v688_v0 = vrot.slane %v371_v47, %v2400_v42 }
  0xf2   : > { %v941_v5 = vrot.slane %v443_v1, %v575_v28 }
  0xf3   : > { %v858_v6 = vsel %vm570_vm2, %v857_v4, %v853_v59  ;;  %v2428_v4 = vsub.s32 %v628_v51, %v2319_v50 }
  0xf4   : > { %v942_v7 = vsel %vm577_vm3, %v941_v5, %v937_v60  ;;  %v273_v8 = vpop.xlane.xlu0 %272  ;;  %v2420_v60 = vsub.s32 %v614_v43, %v2319_v50  ;;  %v649_v5 = vadd.s32 4294967176, %v2317_v49  ;;  %v689_v49 = vsel %vm591_vm5, %v688_v0, %v2348_v57 }
  0xf5   : > { %v324_v9 = vpop.xlane.xlu1 %323  ;;  %v355_v53 = vmul.f32 0.00390625, %v273_v8  ;;  %v2433_v8 = vsub.s32 %v635_v55, %v2319_v50 }
  0xf6   : > { %v372_v58 = vmul.f32 0.00390625, %v324_v9  ;;  %v2447_v37 = vsub.s32 %v649_v5, %v2319_v50 }
  0xf8   : > { %v395_v10 = vpop.xlane.xlu0 %394 }
  0xf9   : > { %v862_v11 = vrot.slane %v395_v10, %v575_v28  ;;  %v446_v13 = vpop.xlane.xlu1 %445  ;;  %v693_v10 = vrot.slane %v372_v58, %v2404_v44 }
  0xfa   : > { %v946_v14 = vrot.slane %v446_v13, %v2343_v45 }
  0xfb   : > { %v2360_v15 = vsel %vm577_vm3, %v862_v11, %v858_v6  ;;  %v590_v6 = vrot.slane %v355_v53, %v2400_v42  ;;  %v694_v57 = vsel %vm598_vm6, %v693_v10, %v689_v49 }
  0xfc   : > { %v2363_v16 = vsel %vm584_vm4, %v946_v14, %v942_v7  ;;  %v276_v12 = vpop.xlane.xlu0 %275 }
  0xfd   : > { %v327_v17 = vpop.xlane.xlu1 %326  ;;  %v356_v59 = vmul.f32 0.00390625, %v276_v12 }
  0xfe   : > { %v373_v61 = vmul.f32 0.00390625, %v327_v17  ;;  %v2439_v17 = vsub.s32 %v642_v63, %v2319_v50 }
  0xff   : > { %v597_v11 = vrot.slane %v356_v59, %v2404_v44 }
 0x100   : > { %v2365_v18 = vpop.xlane.xlu0 %397  ;;  %v698_v14 = vrot.slane %v373_v61, %v2408_v48 }
 0x101   : > { %v2367_v19 = vpop.xlane.xlu1 %448  ;;  %v867_v51 = vrot.slane %v2365_v18, %v2343_v45 }
 0x102   : > { %v699_v47 = vsel %vm605_vm7, %v698_v14, %v694_v57  ;;  %v951_v53 = vrot.slane %v2367_v19, %v2400_v42 }
 0x104   : > { %v2369_v20 = vpop.xlane.xlu0 %278 }
 0x105   : > { %v330_v21 = vpop.xlane.xlu1 %329 }
 0x106   : > { %v374_v2 = vmul.f32 0.00390625, %v330_v21 }
 0x108   : > { %v2371_v22 = vpop.xlane.xlu0 %400  ;;  %v703_v21 = vrot.slane %v374_v2, %v2414_v54 }
 0x109   : > { %v2373_v23 = vpop.xlane.xlu1 %451  ;;  %v872_v2 = vrot.slane %v2371_v22, %v2400_v42 }
 0x10a   : > { %v704_v55 = vsel %vm612_vm8, %v703_v21, %v699_v47 }
 0x10c   : > { %v2375_v24 = vpop.xlane.xlu0 %281 }
 0x10d   : > { %v333_v25 = vpop.xlane.xlu1 %332 }
 0x10e   : > { %v375_v7 = vmul.f32 0.00390625, %v333_v25 }
 0x110   : > { %v2377_v26 = vpop.xlane.xlu0 %403  ;;  %v708_v38 = vrot.slane %v375_v7, %v2420_v60 }
 0x111   : > { %v2379_v27 = vpop.xlane.xlu1 %454  ;;  %v877_v42 = vrot.slane %v2377_v26, %v2404_v44 }
 0x112   : > { %v709_v0 = vsel %vm619_vm9, %v708_v38, %v704_v55  ;;  %v961_v21 = vrot.slane %v2379_v27, %v2408_v48 }
 0x114   : > { %v2381_v28 = vpop.xlane.xlu0 %284 }
 0x115   : > { %v336_v29 = vpop.xlane.xlu1 %335  ;;  %v359_v58 = vmul.f32 0.00390625, %v2381_v28 }
 0x116   : > { %v376_v13 = vmul.f32 0.00390625, %v336_v29  ;;  %v592_v29 = vsel %vm591_vm5, %v590_v6, %v2354_v3  ;;  %v358_v3 = vmul.f32 0.00390625, %v2375_v24  ;;  %v956_v6 = vrot.slane %v2373_v23, %v2404_v44 }
 0x117   : > { %v599_v46 = vsel %vm598_vm6, %v597_v11, %v592_v29 }
 0x118   : > { %v2383_v30 = vpop.xlane.xlu0 %406  ;;  %v611_v7 = vrot.slane %v358_v3, %v2414_v54 }
 0x119   : > { %v2385_v31 = vpop.xlane.xlu1 %457  ;;  %v882_v27 = vrot.slane %v2383_v30, %v2408_v48 }
 0x11c   : > { %v2387_v32 = vpop.xlane.xlu0 %287 }
 0x11d   : > { %v339_v33 = vpop.xlane.xlu1 %338  ;;  %v360_v45 = vmul.f32 0.00390625, %v2387_v32  ;;  %v618_v32 = vrot.slane %v359_v58, %v2420_v60 }
 0x11e   : > { %v377_v12 = vmul.f32 0.00390625, %v339_v33  ;;  %v357_v33 = vmul.f32 0.00390625, %v2369_v20 }
 0x11f   : > { %v625_v23 = vrot.slane %v360_v45, %v2423_v62 }
 0x120   : > { %v2389_v34 = vpop.xlane.xlu0 %409  ;;  %v718_v20 = vrot.slane %v377_v12, %v2428_v4  ;;  %v604_v63 = vrot.slane %v357_v33, %v2408_v48 }
 0x121   : > { %v2391_v35 = vpop.xlane.xlu1 %460 }
 0x122   : > { %v606_v49 = vsel %vm605_vm7, %v604_v63, %v599_v46  ;;  %v971_v30 = vrot.slane %v2391_v35, %v2420_v60 }
 0x123   : > { %v613_v26 = vsel %vm612_vm8, %v611_v7, %v606_v49 }
 0x124   : > { %v2396_v39 = vpop.xlane.xlu0 %290 }
 0x125   : > { %v342_v41 = vpop.xlane.xlu1 %341  ;;  %v361_v5 = vmul.f32 0.00390625, %v2396_v39  ;;  %v868_v39 = vsel %vm584_vm4, %v867_v51, %v2360_v15  ;;  %v952_v15 = vsel %vm591_vm5, %v951_v53, %v2363_v16  ;;  %v966_v16 = vrot.slane %v2385_v31, %v2414_v54 }
 0x126   : > { %v378_v25 = vmul.f32 0.00390625, %v342_v41  ;;  %v713_v41 = vrot.slane %v376_v13, %v2423_v62  ;;  %v873_v33 = vsel %vm591_vm5, %v872_v2, %v868_v39  ;;  %v957_v38 = vsel %vm598_vm6, %v956_v6, %v952_v15  ;;  %v512_v39 = vld [vmem:[%s2746_s2 + $0x18] sm:$0xff] }
 0x127   : > { %v887_v53 = vrot.slane %v2389_v34, %v2414_v54 }
 0x128   : > { %v2411_v52 = vpop.xlane.xlu0 %412  ;;  %v723_v59 = vrot.slane %v378_v25, %v2433_v8  ;;  %v714_v19 = vsel %vm626_vm10, %v713_v41, %v709_v0  ;;  %v632_v25 = vrot.slane %v361_v5, %v2428_v4  ;;  %v878_v41 = vsel %vm598_vm6, %v877_v42, %v873_v33 }
 0x129   : > { %v2417_v56 = vpop.xlane.xlu1 %463  ;;  %v719_v10 = vsel %vm633_vm11, %v718_v20, %v714_v19  ;;  %v962_v20 = vsel %vm605_vm7, %v961_v21, %v957_v38  ;;  %v892_v55 = vrot.slane %v2411_v52, %v2420_v60 }
 0x12a   : > { %v724_v22 = vsel %vm640_vm12, %v723_v59, %v719_v10  ;;  %v976_v31 = vrot.slane %v2417_v56, %v2423_v62  ;;  %v967_v52 = vsel %vm612_vm8, %v966_v16, %v962_v20  ;;  %v1234_v20 = vsub.s32 0, %v2319_v50 }
 0x12c   : > { %v294_v1 = vpop.xlane.xlu0 %293 }
 0x12d   : > { %v345_v9 = vpop.xlane.xlu1 %344 }
 0x12e   : > { %v379_v40 = vmul.f32 0.00390625, %v345_v9  ;;  %v362_v9 = vmul.f32 0.00390625, %v294_v1 }
 0x130   : > { %v2444_v36 = vpop.xlane.xlu0 %415  ;;  %v728_v18 = vrot.slane %v379_v40, %v2439_v17  ;;  %v639_v44 = vrot.slane %v362_v9, %v2433_v8  ;;  %v620_v40 = vsel %vm619_vm9, %v618_v32, %v613_v26 }
 0x131   : > { %v2453_v43 = vpop.xlane.xlu1 %466  ;;  %v627_v47 = vsel %vm626_vm10, %v625_v23, %v620_v40  ;;  %v897_v34 = vrot.slane %v2444_v36, %v2423_v62  ;;  %v511_v23 = vld [vmem:[%s2746_s2 + $0x10] sm:$0xff] }
 0x132   : > { %v729_v1 = vsel %vm647_vm13, %v728_v18, %v724_v22  ;;  %v634_v48 = vsel %vm633_vm11, %v632_v25, %v627_v47  ;;  %v981_v35 = vrot.slane %v2453_v43, %v2428_v4  ;;  %v510_v22 = vld [vmem:[%s2746_s2 + $0x8] sm:$0xff] }
 0x133   : > { %v641_v59 = vsel %vm640_vm12, %v639_v44, %v634_v48  ;;  %v1735_v42 = vpack.c.bf16 %v512_v39, %v510_v22  ;;  %v1816_v22 = vld [vmem:[%s2103_s11 + $0x50] sm:$0xff] }
 0x134   : > { %v297_v61 = vpop.xlane.xlu0 %296 }
 0x135   : > { %v348_v24 = vpop.xlane.xlu1 %347  ;;  %v363_v11 = vmul.f32 0.00390625, %v297_v61  ;;  %v883_v61 = vsel %vm605_vm7, %v882_v27, %v878_v41  ;;  %1740 = vmatprep.subr.bf16.mxu0 %v1735_v42  ;;  %1736 = vmatprep.subr.bf16.mxu1 %v1735_v42  ;;  %v1817_v42 = vld [vmem:[%s2103_s11 + $0x58] sm:$0xff] }
 0x136   : > { %v380_v28 = vmul.f32 0.00390625, %v348_v24  ;;  %v888_v18 = vsel %vm612_vm8, %v887_v53, %v883_v61  ;;  %v972_v24 = vsel %vm619_vm9, %v971_v30, %v967_v52  ;;  %v1804_v61 = vld [vmem:[%s2103_s11 + $0x10] sm:$0xff] }
 0x137   : > { %v646_v57 = vrot.slane %v363_v11, %v2439_v17  ;;  %v893_v43 = vsel %vm619_vm9, %v892_v55, %v888_v18  ;;  %v977_v2 = vsel %vm626_vm10, %v976_v31, %v972_v24  ;;  %v1808_v18 = vld [vmem:[%s2103_s11 + $0x20] sm:$0xff] }
 0x138   : > { %v733_v13 = vrot.slane %v380_v28, %v2447_v37  ;;  %v419_v14 = vpop.xlane.xlu0 %418  ;;  %v898_v19 = vsel %vm626_vm10, %v897_v34, %v893_v43  ;;  %v982_v5 = vsel %vm633_vm11, %v981_v35, %v977_v2  ;;  %v1805_v35 = vld [vmem:[%s2103_s11 + $0x18] sm:$0xff]  ;;  %v1810_v43 = vld [vmem:[%s2103_s11 + $0x40] sm:$0xff] }
 0x139   : > { %v470_v12 = vpop.xlane.xlu1 %469  ;;  %v648_v63 = vsel %vm647_vm13, %v646_v57, %v641_v59  ;;  %v902_v60 = vrot.slane %v419_v14, %v2428_v4 }
 0x13a   : > { %v734_v29 = vsel %vm654_vm14, %v733_v13, %v729_v1  ;;  %v986_v56 = vrot.slane %v470_v12, %v2433_v8  ;;  %v1969_v1 = vmov 0.0  }
 0x13b   : > { %801 = vmatprep.mubr.f32.mxu0 %v734_v29  ;;  %v903_v6 = vsel %vm633_vm11, %v902_v60, %v898_v19  ;;  %v1807_v60 = vld [vmem:[%s2103_s11 + $0x8] sm:$0xff] }
 0x13c   : > { %v300_v46 = vpop.xlane.xlu0 %299 }
 0x13d   : > { %v364_v51 = vmul.f32 0.00390625, %v300_v46  ;;  %v422_v3 = vpop.xlane.xlu1 %421 }
 0x13e   : > { %v907_v62 = vrot.slane %v422_v3, %v2433_v8  ;;  %v987_v8 = vsel %vm640_vm12, %v986_v56, %v982_v5 }
 0x13f   : > { %v653_v58 = vrot.slane %v364_v51, %v2447_v37 }
 0x140   : > { %v473_v54 = vpop.xlane.xlu0 %472  ;;  %v908_v10 = vsel %vm640_vm12, %v907_v62, %v903_v6  ;;  %v1809_v62 = vld [vmem:[%s2103_s11 + $0x28] sm:$0xff]  ;;  %v1812_v6 = vld [vmem:[%s2103_s11 + $0x30] sm:$0xff] }
 0x141   : > { %v425_v0 = vpop.xlane.xlu1 %424  ;;  %v655_v45 = vsel %vm654_vm14, %v653_v58, %v648_v63  ;;  %v991_v36 = vrot.slane %v473_v54, %v2439_v17  ;;  %v1806_v63 = vld [vmem:[%s2103_s11] sm:$0xff] }
 0x142   : > { %802 = vmatmul.mubr.f32.vlgmr.msra.gmra.mrb[0].mxu0 %v655_v45  ;;  %v912_v4 = vrot.slane %v425_v0, %v2439_v17 }
 0x143   : > { %v992_v11 = vsel %vm647_vm13, %v991_v36, %v987_v8  ;;  %1213 = vmatprep.mubr.f32.mxu0 %v1969_v1 }
 0x144   : > { %v476_v28 = vpop.xlane.xlu0 %475  ;;  %v913_v13 = vsel %vm647_vm13, %v912_v4, %v908_v10  ;;  %v1811_v4 = vld [vmem:[%s2103_s11 + $0x48] sm:$0xff]  ;;  %v1814_v10 = vld [vmem:[%s2103_s11 + $0x60] sm:$0xff] }
 0x145   : > { %v996_v7 = vrot.slane %v476_v28, %v2447_v37  ;;  %v428_v9 = vpop.xlane.xlu1 %427 }
 0x146   : > { %v917_v32 = vrot.slane %v428_v9, %v2447_v37  ;;  %v509_v37 = vld [vmem:[%s2746_s2] sm:$0xff]  ;;  %v1813_v9 = vld [vmem:[%s2103_s11 + $0x38] sm:$0xff] }
 0x147   : > { %v997_v17 = vsel %vm654_vm14, %v996_v7, %v992_v11  ;;  %v1737_v12 = vpack.c.bf16 %v511_v23, %v509_v37  ;;  %v1815_v11 = vld [vmem:[%s2103_s11 + $0x68] sm:$0xff]  ;;  %v1818_v23 = vld [vmem:[%s2103_s11 + $0x80] sm:$0xff] }
 0x148   : > { %1064 = vmatprep.mubr.f32.mxu1 %v997_v17  ;;  %v918_v14 = vsel %vm654_vm14, %v917_v32, %v913_v13 }
 0x149   : > { %1065 = vmatmul.mubr.f32.vlgmr.msra.gmra.mrb[0].mxu1 %v918_v14  ;;  %1742 = vmatpush1.bf16.msra.mxu0 %v1737_v12 }
 0x14a   : > { %1738 = vmatpush1.bf16.msra.mxu1 %v1737_v12  ;;  %1139 = vmatprep.mubr.f32.mxu1 %v1969_v1  ;;  %v1819_v1 = vld [vmem:[%s2103_s11 + $0x88] sm:$0xff] }
 0x215   : > { %v1633_v49 = vpop.f32.mrb[0].mxu0 }
 0x216   : > { %v1634_v21 = vpop.f32.mrb[1].mxu0 }
 0x217   : > { %v1635_v25 = vadd.f32 %v1634_v21, %v1633_v49 }
 0x219   : > { %v807_v29 = vmax.f32 %v1635_v25, 0.0 }
 0x21b   : > { %1591 = vmatmul.mubr.msk.f32.vlgmr.msra.gmra.mrb[2].mxu0 %vm1071_vm15, %v807_v29  ;;  %v1820_v29 = vld [vmem:[%s2103_s11 + $0x70] sm:$0xff] }
 0x21c   : > { %v1668_v15 = vpop.f32.mrb[0].mxu1 }
 0x21d   : > { %v1669_v33 = vpop.f32.mrb[1].mxu1 }
 0x21e   : > { %v1670_v26 = vadd.f32 %v1669_v33, %v1668_v15  ;;  %v1821_v33 = vld [vmem:[%s2103_s11 + $0x78] sm:$0xff] }
 0x220   : > { %v1070_v44 = vmax.f32 %v1670_v26, 0.0 }
 0x222   : > { %1590 = vmatmul.mubr.msk.f32.vlgmr.msra.gmra.mrb[2].mxu1 %vm1071_vm15, %v1070_v44  ;;  %v1822_v44 = vld [vmem:[%s2103_s11 + $0xa0] sm:$0xff] }
 0x2ee   : > { %v1215_v38 = vpop.f32.mrb[2].mxu0 }
 0x2ef   : > { %v1217_v40 = vpop.f32.mrb[3].mxu0 }
 0x2f5   : > { %v1141_v27 = vpop.f32.mrb[2].mxu1 }
 0x2f6   : > { %v1216_v57 = vadd.f32 %v1215_v38, %v1141_v27  ;;  %v1143_v46 = vpop.f32.mrb[3].mxu1 }
 0x2f7   : > { %v1218_v41 = vadd.f32 %v1217_v40, %v1143_v46  ;;  %v1823_v40 = vld [vmem:[%s2103_s11 + $0xa8] sm:$0xff] }
 0x2f8   : > { %v1592_v16 = vmul.f32 -1.442695, %v1216_v57 }
 0x2f9   : > { %v1593_v3 = vmul.f32 -1.442695, %v1218_v41  ;;  %v1824_v41 = vld [vmem:[%s2103_s11 + $0x90] sm:$0xff] }
 0x2fa   : > { %1796 = vpow2.f32 %v1592_v16 }
 0x304   : > { %v1797_v47 = vpop.eup %1796 }
 0x305   : > { %v1226_v51 = vadd.f32 1.0, %v1797_v47  ;;  %v1825_v47 = vld [vmem:[%s2103_s11 + $0x98] sm:$0xff] }
 0x307   : > { %1798 = vrcp.f32 %v1226_v51 }
 0x308   : > { %1800 = vpow2.f32 %v1593_v3  ;;  %v1826_v3 = vld [vmem:[%s2103_s11 + $0xc0] sm:$0xff] }
 0x311   : > { %v1799_v53 = vpop.eup %1798 }
 0x312   : > { %v1235_v30 = vrot.slane %v1799_v53, %v1234_v20  ;;  %v1801_v48 = vpop.eup %1800  ;;  %v1827_v53 = vld [vmem:[%s2103_s11 + $0xc8] sm:$0xff] }
 0x313   : > { %v1227_v55 = vadd.f32 1.0, %v1801_v48 }
 0x314   : > { %1241 = vbcast.lane.b32.xlu1 %v1235_v30, 264  ;;  %1237 = vbcast.lane.b32.xlu0 %v1235_v30, 256 }
 0x315   : > { %1802 = vrcp.f32 %v1227_v55 }
 0x318   : > { %1245 = vbcast.lane.b32.xlu1 %v1235_v30, 272  ;;  %1253 = vbcast.lane.b32.xlu0 %v1235_v30, 288 }
 0x31c   : > { %1249 = vbcast.lane.b32.xlu1 %v1235_v30, 280  ;;  %1261 = vbcast.lane.b32.xlu0 %v1235_v30, 304 }
 0x31f   : > { %v1803_v31 = vpop.eup %1802 }
 0x320   : > { %1257 = vbcast.lane.b32.xlu1 %v1235_v30, 296  ;;  %1269 = vbcast.lane.b32.xlu0 %v1235_v30, 320  ;;  %v1302_v50 = vrot.slane %v1803_v31, %v1234_v20  ;;  %v1828_v31 = vld [vmem:[%s2103_s11 + $0xb0] sm:$0xff] }
 0x324   : > { %1265 = vbcast.lane.b32.xlu1 %v1235_v30, 312  ;;  %1277 = vbcast.lane.b32.xlu0 %v1235_v30, 336 }
 0x328   : > { %1273 = vbcast.lane.b32.xlu1 %v1235_v30, 328  ;;  %1285 = vbcast.lane.b32.xlu0 %v1235_v30, 352 }
 0x32c   : > { %1281 = vbcast.lane.b32.xlu1 %v1235_v30, 344  ;;  %1293 = vbcast.lane.b32.xlu0 %v1235_v30, 368 }
 0x330   : > { %1289 = vbcast.lane.b32.xlu1 %v1235_v30, 360  ;;  %1304 = vbcast.lane.b32.xlu0 %v1302_v50, 256 }
 0x334   : > { %1297 = vbcast.lane.b32.xlu1 %v1235_v30, 376  ;;  %1312 = vbcast.lane.b32.xlu0 %v1302_v50, 272 }
 0x338   : > { %1308 = vbcast.lane.b32.xlu1 %v1302_v50, 264  ;;  %1320 = vbcast.lane.b32.xlu0 %v1302_v50, 288 }
 0x33c   : > { %1316 = vbcast.lane.b32.xlu1 %v1302_v50, 280  ;;  %1328 = vbcast.lane.b32.xlu0 %v1302_v50, 304 }
 0x340   : > { %1324 = vbcast.lane.b32.xlu1 %v1302_v50, 296  ;;  %1336 = vbcast.lane.b32.xlu0 %v1302_v50, 320 }
 0x344   : > { %1332 = vbcast.lane.b32.xlu1 %v1302_v50, 312  ;;  %1344 = vbcast.lane.b32.xlu0 %v1302_v50, 336 }
 0x348   : > { %1340 = vbcast.lane.b32.xlu1 %v1302_v50, 328  ;;  %1352 = vbcast.lane.b32.xlu0 %v1302_v50, 352 }
 0x34c   : > { %1348 = vbcast.lane.b32.xlu1 %v1302_v50, 344  ;;  %1360 = vbcast.lane.b32.xlu0 %v1302_v50, 368 }
 0x350   : > { %1356 = vbcast.lane.b32.xlu1 %v1302_v50, 360 }
 0x354   : > { %1364 = vbcast.lane.b32.xlu1 %v1302_v50, 376 }
 0x386   : > { %v1242_v58 = vpop.permute.xlu1 %1241  ;;  %v1238_v59 = vpop.permute.xlu0 %1237 }
 0x387   : > { %v1368_v34 = vmul.f32 %v1804_v61, %v1242_v58  ;;  %v1369_v54 = vmul.f32 %v1805_v35, %v1242_v58  ;;  %v1366_v52 = vmul.f32 %v1806_v63, %v1238_v59  ;;  %v1367_v56 = vmul.f32 %v1807_v60, %v1238_v59  ;;  %v1829_v58 = vld [vmem:[%s2103_s11 + $0xb8] sm:$0xff]  ;;  %v1830_v61 = vld [vmem:[%s2103_s11 + $0xe0] sm:$0xff]  ;;  %v1831_v35 = vld [vmem:[%s2103_s11 + $0xe8] sm:$0xff] }
 0x388   : > { %v1832_v60 = vld [vmem:[%s2103_s11 + $0xd0] sm:$0xff] }
 0x389   : > { %1432 = vst [vmem:[%s2567_s29 + $0x10] sm:$0xff] %v1368_v34  ;;  %1433 = vst [vmem:[%s2567_s29 + $0x18] sm:$0xff] %v1369_v54 }
 0x38a   : > { %1430 = vst [vmem:[%s2567_s29] sm:$0xff] %v1366_v52  ;;  %1431 = vst [vmem:[%s2567_s29 + $0x8] sm:$0xff] %v1367_v56  ;;  %v1246_v0 = vpop.permute.xlu1 %1245  ;;  %v1254_v45 = vpop.permute.xlu0 %1253 }
 0x38b   : > { %v1370_v24 = vmul.f32 %v1808_v18, %v1246_v0  ;;  %v1371_v36 = vmul.f32 %v1809_v62, %v1246_v0  ;;  %v1374_v2 = vmul.f32 %v1810_v43, %v1254_v45  ;;  %v1375_v19 = vmul.f32 %v1811_v4, %v1254_v45  ;;  %v1833_v0 = vld [vmem:[%s2103_s11 + $0xd8] sm:$0xff]  ;;  %v1834_v18 = vld [vmem:[%s2103_s11 + $0x100] sm:$0xff]  ;;  %v1835_v62 = vld [vmem:[%s2103_s11 + $0x108] sm:$0xff] }
 0x38c   : > { %v1836_v4 = vld [vmem:[%s2103_s11 + $0xf0] sm:$0xff] }
 0x38d   : > { %1434 = vst [vmem:[%s2567_s29 + $0x20] sm:$0xff] %v1370_v24  ;;  %1435 = vst [vmem:[%s2567_s29 + $0x28] sm:$0xff] %v1371_v36 }
 0x38e   : > { %1438 = vst [vmem:[%s2567_s29 + $0x40] sm:$0xff] %v1374_v2  ;;  %1439 = vst [vmem:[%s2567_s29 + $0x48] sm:$0xff] %v1375_v19  ;;  %v1250_v5 = vpop.permute.xlu1 %1249  ;;  %v1262_v28 = vpop.permute.xlu0 %1261 }
 0x38f   : > { %v1372_v7 = vmul.f32 %v1812_v6, %v1250_v5  ;;  %v1373_v8 = vmul.f32 %v1813_v9, %v1250_v5  ;;  %v1378_v32 = vmul.f32 %v1814_v10, %v1262_v28  ;;  %v1379_v17 = vmul.f32 %v1815_v11, %v1262_v28  ;;  %v1837_v5 = vld [vmem:[%s2103_s11 + $0xf8] sm:$0xff]  ;;  %v1838_v6 = vld [vmem:[%s2103_s11 + $0x120] sm:$0xff]  ;;  %v1839_v9 = vld [vmem:[%s2103_s11 + $0x128] sm:$0xff] }
 0x390   : > { %v1840_v11 = vld [vmem:[%s2103_s11 + $0x110] sm:$0xff] }
 0x391   : > { %1436 = vst [vmem:[%s2567_s29 + $0x30] sm:$0xff] %v1372_v7  ;;  %1437 = vst [vmem:[%s2567_s29 + $0x38] sm:$0xff] %v1373_v8 }
 0x392   : > { %1442 = vst [vmem:[%s2567_s29 + $0x60] sm:$0xff] %v1378_v32  ;;  %1443 = vst [vmem:[%s2567_s29 + $0x68] sm:$0xff] %v1379_v17  ;;  %v1258_v13 = vpop.permute.xlu1 %1257  ;;  %v1270_v14 = vpop.permute.xlu0 %1269 }
 0x393   : > { %v1376_v39 = vmul.f32 %v1816_v22, %v1258_v13  ;;  %v1377_v37 = vmul.f32 %v1817_v42, %v1258_v13  ;;  %v1382_v12 = vmul.f32 %v1818_v23, %v1270_v14  ;;  %v1383_v49 = vmul.f32 %v1819_v1, %v1270_v14  ;;  %v1841_v13 = vld [vmem:[%s2103_s11 + $0x118] sm:$0xff]  ;;  %v1842_v22 = vld [vmem:[%s2103_s11 + $0x140] sm:$0xff]  ;;  %v1843_v42 = vld [vmem:[%s2103_s11 + $0x148] sm:$0xff] }
 0x394   : > { %v1844_v1 = vld [vmem:[%s2103_s11 + $0x130] sm:$0xff] }
 0x395   : > { %1440 = vst [vmem:[%s2567_s29 + $0x50] sm:$0xff] %v1376_v39  ;;  %1441 = vst [vmem:[%s2567_s29 + $0x58] sm:$0xff] %v1377_v37 }
 0x396   : > { %1446 = vst [vmem:[%s2567_s29 + $0x80] sm:$0xff] %v1382_v12  ;;  %1447 = vst [vmem:[%s2567_s29 + $0x88] sm:$0xff] %v1383_v49  ;;  %v1266_v21 = vpop.permute.xlu1 %1265  ;;  %v1278_v25 = vpop.permute.xlu0 %1277 }
 0x397   : > { %v1380_v15 = vmul.f32 %v1820_v29, %v1266_v21  ;;  %v1381_v26 = vmul.f32 %v1821_v33, %v1266_v21  ;;  %v1386_v38 = vmul.f32 %v1822_v44, %v1278_v25  ;;  %v1387_v27 = vmul.f32 %v1823_v40, %v1278_v25  ;;  %v1845_v21 = vld [vmem:[%s2103_s11 + $0x138] sm:$0xff]  ;;  %v1846_v29 = vld [vmem:[%s2103_s11 + $0x160] sm:$0xff]  ;;  %v1847_v33 = vld [vmem:[%s2103_s11 + $0x168] sm:$0xff] }
 0x398   : > { %v1848_v40 = vld [vmem:[%s2103_s11 + $0x150] sm:$0xff] }
 0x399   : > { %1444 = vst [vmem:[%s2567_s29 + $0x70] sm:$0xff] %v1380_v15  ;;  %1445 = vst [vmem:[%s2567_s29 + $0x78] sm:$0xff] %v1381_v26 }
 0x39a   : > { %1450 = vst [vmem:[%s2567_s29 + $0xa0] sm:$0xff] %v1386_v38  ;;  %1451 = vst [vmem:[%s2567_s29 + $0xa8] sm:$0xff] %v1387_v27  ;;  %v1274_v57 = vpop.permute.xlu1 %1273  ;;  %v1286_v46 = vpop.permute.xlu0 %1285 }
 0x39b   : > { %v1384_v16 = vmul.f32 %v1824_v41, %v1274_v57  ;;  %v1385_v51 = vmul.f32 %v1825_v47, %v1274_v57  ;;  %v1390_v20 = vmul.f32 %v1826_v3, %v1286_v46  ;;  %v1391_v30 = vmul.f32 %v1827_v53, %v1286_v46  ;;  %v1849_v57 = vld [vmem:[%s2103_s11 + $0x158] sm:$0xff]  ;;  %v1850_v41 = vld [vmem:[%s2103_s11 + $0x180] sm:$0xff]  ;;  %v1851_v47 = vld [vmem:[%s2103_s11 + $0x188] sm:$0xff] }
 0x39c   : > { %v1852_v53 = vld [vmem:[%s2103_s11 + $0x170] sm:$0xff] }
 0x39d   : > { %1448 = vst [vmem:[%s2567_s29 + $0x90] sm:$0xff] %v1384_v16  ;;  %1449 = vst [vmem:[%s2567_s29 + $0x98] sm:$0xff] %v1385_v51 }
 0x39e   : > { %1454 = vst [vmem:[%s2567_s29 + $0xc0] sm:$0xff] %v1390_v20  ;;  %1455 = vst [vmem:[%s2567_s29 + $0xc8] sm:$0xff] %v1391_v30  ;;  %v1282_v48 = vpop.permute.xlu1 %1281  ;;  %v1294_v55 = vpop.permute.xlu0 %1293 }
 0x39f   : > { %v1388_v50 = vmul.f32 %v1828_v31, %v1282_v48  ;;  %v1389_v59 = vmul.f32 %v1829_v58, %v1282_v48  ;;  %v1394_v34 = vmul.f32 %v1830_v61, %v1294_v55  ;;  %v1395_v54 = vmul.f32 %v1831_v35, %v1294_v55  ;;  %v1853_v48 = vld [vmem:[%s2103_s11 + $0x178] sm:$0xff]  ;;  %v1854_v31 = vld [vmem:[%s2103_s11 + $0x1a0] sm:$0xff]  ;;  %v1855_v58 = vld [vmem:[%s2103_s11 + $0x1a8] sm:$0xff] }
 0x3a0   : > { %v1856_v35 = vld [vmem:[%s2103_s11 + $0x190] sm:$0xff] }
 0x3a1   : > { %1452 = vst [vmem:[%s2567_s29 + $0xb0] sm:$0xff] %v1388_v50  ;;  %1453 = vst [vmem:[%s2567_s29 + $0xb8] sm:$0xff] %v1389_v59 }
 0x3a2   : > { %1458 = vst [vmem:[%s2567_s29 + $0xe0] sm:$0xff] %v1394_v34  ;;  %1459 = vst [vmem:[%s2567_s29 + $0xe8] sm:$0xff] %v1395_v54  ;;  %v1290_v63 = vpop.permute.xlu1 %1289  ;;  %v1305_v52 = vpop.permute.xlu0 %1304 }
 0x3a3   : > { %v1392_v56 = vmul.f32 %v1832_v60, %v1290_v63  ;;  %v1393_v45 = vmul.f32 %v1833_v0, %v1290_v63  ;;  %v1398_v24 = vmul.f32 %v1834_v18, %v1305_v52  ;;  %v1399_v36 = vmul.f32 %v1835_v62, %v1305_v52  ;;  %v1857_v63 = vld [vmem:[%s2103_s11 + $0x198] sm:$0xff]  ;;  %v1858_v60 = vld [vmem:[%s2103_s11 + $0x1c0] sm:$0xff]  ;;  %v1859_v0 = vld [vmem:[%s2103_s11 + $0x1c8] sm:$0xff] }
 0x3a4   : > { %v1860_v62 = vld [vmem:[%s2103_s11 + $0x1b0] sm:$0xff] }
 0x3a5   : > { %1456 = vst [vmem:[%s2567_s29 + $0xd0] sm:$0xff] %v1392_v56  ;;  %1457 = vst [vmem:[%s2567_s29 + $0xd8] sm:$0xff] %v1393_v45 }
 0x3a6   : > { %1462 = vst [vmem:[%s2567_s29 + $0x100] sm:$0xff] %v1398_v24  ;;  %1463 = vst [vmem:[%s2567_s29 + $0x108] sm:$0xff] %v1399_v36  ;;  %v1298_v43 = vpop.permute.xlu1 %1297  ;;  %v1313_v2 = vpop.permute.xlu0 %1312 }
 0x3a7   : > { %v1396_v19 = vmul.f32 %v1836_v4, %v1298_v43  ;;  %v1397_v28 = vmul.f32 %v1837_v5, %v1298_v43  ;;  %v1402_v7 = vmul.f32 %v1838_v6, %v1313_v2  ;;  %v1403_v8 = vmul.f32 %v1839_v9, %v1313_v2  ;;  %v1861_v43 = vld [vmem:[%s2103_s11 + $0x1b8] sm:$0xff]  ;;  %v1862_v4 = vld [vmem:[%s2103_s11 + $0x1e0] sm:$0xff]  ;;  %v1863_v5 = vld [vmem:[%s2103_s11 + $0x1e8] sm:$0xff] }
 0x3a9   : > { %1460 = vst [vmem:[%s2567_s29 + $0xf0] sm:$0xff] %v1396_v19  ;;  %1461 = vst [vmem:[%s2567_s29 + $0xf8] sm:$0xff] %v1397_v28 }
 0x3aa   : > { %1466 = vst [vmem:[%s2567_s29 + $0x120] sm:$0xff] %v1402_v7  ;;  %1467 = vst [vmem:[%s2567_s29 + $0x128] sm:$0xff] %v1403_v8  ;;  %v1309_v10 = vpop.permute.xlu1 %1308  ;;  %v1321_v32 = vpop.permute.xlu0 %1320  ;;  %v1864_v7 = vld [vmem:[%s2103_s11 + $0x1d0] sm:$0xff]  ;;  %v1865_v8 = vld [vmem:[%s2103_s11 + $0x1d8] sm:$0xff] }
 0x3ab   : > { %v1400_v17 = vmul.f32 %v1840_v11, %v1309_v10  ;;  %v1401_v14 = vmul.f32 %v1841_v13, %v1309_v10  ;;  %v1406_v39 = vmul.f32 %v1842_v22, %v1321_v32  ;;  %v1407_v37 = vmul.f32 %v1843_v42, %v1321_v32  ;;  %v1866_v11 = vld [vmem:[%s2103_s11 + $0x1f0] sm:$0xff]  ;;  %v1867_v13 = vld [vmem:[%s2103_s11 + $0x1f8] sm:$0xff] }
 0x3ad   : > { %1464 = vst [vmem:[%s2567_s29 + $0x110] sm:$0xff] %v1400_v17  ;;  %1465 = vst [vmem:[%s2567_s29 + $0x118] sm:$0xff] %v1401_v14 }
 0x3ae   : > { %1470 = vst [vmem:[%s2567_s29 + $0x140] sm:$0xff] %v1406_v39  ;;  %1471 = vst [vmem:[%s2567_s29 + $0x148] sm:$0xff] %v1407_v37  ;;  %v1317_v23 = vpop.permute.xlu1 %1316  ;;  %v1329_v12 = vpop.permute.xlu0 %1328 }
 0x3af   : > { %v1404_v49 = vmul.f32 %v1844_v1, %v1317_v23  ;;  %v1405_v25 = vmul.f32 %v1845_v21, %v1317_v23  ;;  %v1410_v15 = vmul.f32 %v1846_v29, %v1329_v12  ;;  %v1411_v26 = vmul.f32 %v1847_v33, %v1329_v12 }
 0x3b1   : > { %1468 = vst [vmem:[%s2567_s29 + $0x130] sm:$0xff] %v1404_v49  ;;  %1469 = vst [vmem:[%s2567_s29 + $0x138] sm:$0xff] %v1405_v25 }
 0x3b2   : > { %1474 = vst [vmem:[%s2567_s29 + $0x160] sm:$0xff] %v1410_v15  ;;  %1475 = vst [vmem:[%s2567_s29 + $0x168] sm:$0xff] %v1411_v26  ;;  %v1325_v44 = vpop.permute.xlu1 %1324  ;;  %v1337_v38 = vpop.permute.xlu0 %1336 }
 0x3b3   : > { %v1408_v27 = vmul.f32 %v1848_v40, %v1325_v44  ;;  %v1409_v46 = vmul.f32 %v1849_v57, %v1325_v44  ;;  %v1414_v16 = vmul.f32 %v1850_v41, %v1337_v38  ;;  %v1415_v51 = vmul.f32 %v1851_v47, %v1337_v38 }
 0x3b5   : > { %1472 = vst [vmem:[%s2567_s29 + $0x150] sm:$0xff] %v1408_v27  ;;  %1473 = vst [vmem:[%s2567_s29 + $0x158] sm:$0xff] %v1409_v46 }
 0x3b6   : > { %1478 = vst [vmem:[%s2567_s29 + $0x180] sm:$0xff] %v1414_v16  ;;  %1479 = vst [vmem:[%s2567_s29 + $0x188] sm:$0xff] %v1415_v51  ;;  %v1333_v3 = vpop.permute.xlu1 %1332  ;;  %v1345_v20 = vpop.permute.xlu0 %1344 }
 0x3b7   : > { %v1412_v30 = vmul.f32 %v1852_v53, %v1333_v3  ;;  %v1413_v55 = vmul.f32 %v1853_v48, %v1333_v3  ;;  %v1418_v50 = vmul.f32 %v1854_v31, %v1345_v20  ;;  %v1419_v59 = vmul.f32 %v1855_v58, %v1345_v20 }
 0x3b9   : > { %1476 = vst [vmem:[%s2567_s29 + $0x170] sm:$0xff] %v1412_v30  ;;  %1477 = vst [vmem:[%s2567_s29 + $0x178] sm:$0xff] %v1413_v55 }
 0x3ba   : > { %1482 = vst [vmem:[%s2567_s29 + $0x1a0] sm:$0xff] %v1418_v50  ;;  %1483 = vst [vmem:[%s2567_s29 + $0x1a8] sm:$0xff] %v1419_v59  ;;  %v1341_v61 = vpop.permute.xlu1 %1340  ;;  %v1353_v34 = vpop.permute.xlu0 %1352 }
 0x3bb   : > { %v1416_v54 = vmul.f32 %v1856_v35, %v1341_v61  ;;  %v1417_v52 = vmul.f32 %v1857_v63, %v1341_v61  ;;  %v1422_v56 = vmul.f32 %v1858_v60, %v1353_v34  ;;  %v1423_v45 = vmul.f32 %v1859_v0, %v1353_v34 }
 0x3bd   : > { %1480 = vst [vmem:[%s2567_s29 + $0x190] sm:$0xff] %v1416_v54  ;;  %1481 = vst [vmem:[%s2567_s29 + $0x198] sm:$0xff] %v1417_v52 }
 0x3be   : > { %1486 = vst [vmem:[%s2567_s29 + $0x1c0] sm:$0xff] %v1422_v56  ;;  %1487 = vst [vmem:[%s2567_s29 + $0x1c8] sm:$0xff] %v1423_v45  ;;  %v1349_v18 = vpop.permute.xlu1 %1348  ;;  %v1361_v24 = vpop.permute.xlu0 %1360 }
 0x3bf   : > { %v1420_v36 = vmul.f32 %v1860_v62, %v1349_v18  ;;  %v1421_v2 = vmul.f32 %v1861_v43, %v1349_v18  ;;  %v1426_v19 = vmul.f32 %v1862_v4, %v1361_v24  ;;  %v1427_v28 = vmul.f32 %v1863_v5, %v1361_v24 }
 0x3c1   : > { %1484 = vst [vmem:[%s2567_s29 + $0x1b0] sm:$0xff] %v1420_v36  ;;  %1485 = vst [vmem:[%s2567_s29 + $0x1b8] sm:$0xff] %v1421_v2 }
 0x3c2   : > { %1490 = vst [vmem:[%s2567_s29 + $0x1e0] sm:$0xff] %v1426_v19  ;;  %1491 = vst [vmem:[%s2567_s29 + $0x1e8] sm:$0xff] %v1427_v28  ;;  %v1357_v6 = vpop.permute.xlu1 %1356 }
 0x3c3   : > { %v1424_v9 = vmul.f32 %v1864_v7, %v1357_v6  ;;  %v1425_v10 = vmul.f32 %v1865_v8, %v1357_v6 }
 0x3c5   : > { %1488 = vst [vmem:[%s2567_s29 + $0x1d0] sm:$0xff] %v1424_v9  ;;  %1489 = vst [vmem:[%s2567_s29 + $0x1d8] sm:$0xff] %v1425_v10 }
 0x3c6   : > { %v1365_v32 = vpop.permute.xlu1 %1364 }
 0x3c7   : > { %v1428_v17 = vmul.f32 %v1866_v11, %v1365_v32  ;;  %v1429_v14 = vmul.f32 %v1867_v13, %v1365_v32 }
 0x3c9   : > { %1492 = vst [vmem:[%s2567_s29 + $0x1f0] sm:$0xff] %v1428_v17  ;;  %1493 = vst [vmem:[%s2567_s29 + $0x1f8] sm:$0xff] %v1429_v14 }
 0x3ca   : > { %1911 = shalt.err (!%p1908_p2)
}
 0x3cb   : > { %s1912_s11 = scalar_lea.hbm %s2694_s4, 8192  ;;  %s1916_s22 = scalar_lea.hbm %s2747_s3, 16384 }
 0x3cc   : > { %p1913_p4 = scmp.ne.s32.totalorder %s2694_s4, %s1912_s11  ;;  %p1917_p9 = scmp.lt.u32.totalorder %s2694_s4, %s2747_s3 }
 0x3cd   : > { %p1918_p1 = scmp.lt.u32.totalorder %s1916_s22, %s1912_s11  ;;  %p1920_p6 = scmp.lt.u32.totalorder %s1912_s11, %s2694_s4 }
 0x3ce   : > { %p1914_p5 = pnand %p1913_p4, %p2754_p11 }
 0x3cf   : > { %p1919_p3 = por %p1918_p1, %p1917_p9 }
 0x3d0   : > { %p1915_p7 = pneg %p1914_p5 }
 0x3d1   : > { %p1921_p12 = por %p1920_p6, %p1919_p3 }
 0x3d3   : > { %p1922_p13 = pnand %p1921_p12, %p1915_p7 }
 0x3d5   : > { %1925 = shalt.err (!%p1922_p13)
}
 0x3d6   : > { %s1971_s28 = smov 256   ;;  %s1972_s29 = smov 16  }
 0x3d7   : > { %1747 = dma.vmem_to_hbm [thread:$0]  (%p2754_p11), %s2696_s30, 8192, %s2694_s4, %s1495_s16, %s1971_s28, %s1971_s28, %s1972_s29  }
 0x3d8 PF: > { %s1523_s9 = sand.u32 1, %s1952_s12   ;;  %p2755_p8 = scmp.ne.s32.totalorder %s2752_s25, 0 }
 0x3d9   : > { %p2756_p10 = scmp.ge.s32.totalorder %s1964_s15, 2  ;;  %s1524_s10 = scalar_lea.sflag [#allocation4], %s1523_s9 }
 0x3db   : > { %p1754_p0 = pnand %p2756_p10, %p2755_p8 }
 0x3dd   : > { %1947 = dma.done.wait (!%p1754_p0), %s1524_s10, 8192  }
 0x3de   : > { %1949 = vsyncadd (!%p1754_p0), %s1524_s10, 4294959104  ;;  %p16_p2 = scmp.ge.s32.totalorder %s2018_s18, 4   ;;  %s2757_s12 = smov %s1956_s13 }
 0x3df   : > { %s2758_s13 = smov %s1960_s14  ;;  %s2759_s14 = smov %s2030_s21 }
 0x3e0   : > { %s2760_s15 = smov %s2018_s18  ;;  %18 = sbr.rel (!%p16_p2) target bundleno = 5 (0x5), region = 77 }
 0x3e7   :  { %1529 = vsyncpa [#allocation3], 1 }
 0x3e8   :  { %1531 = vsyncpa [#allocation3 + $0x1], 1 }
 0x3e9   :  { %1532 = vsyncpa [#allocation4], 1 }
 0x3ea   :  { %1534 = vsyncpa [#allocation4 + $0x1], 1 }

</bundles_post_ra>
